<compile_context>
chip_gen: v7x
topology: tpu7x:2x2x1
jax: 0.10.0
libtpu: 0.0.40
codegen_flags: <defaults>
</compile_context>

<pallas_src>
import jax
import jax.numpy as jnp
import numpy as np
from jax.experimental import pallas as pl
from jax.experimental.pallas import tpu as pltpu


def _round_up(x, m):
    return ((x + m - 1) // m) * m


def _make_gru_kernel(num_layers, hidden_size, seq_len, batch, in_pad):
    """Build the kernel body for static (L, H, T, B, padded input dim)."""
    L, H, T, B, IP = num_layers, hidden_size, seq_len, batch, in_pad
    H2, H3, H4 = 2 * H, 3 * H, 4 * H

    def kernel(*refs):
        x_ref = refs[0]                      # (T*B, IP)   bf16, time-major rows
        w0_ref = refs[1]                     # (IP+H, 4H)  bf16
        if L > 1:
            wrest_ref = refs[2]              # (L-1, 2H, 4H) bf16
            pb_ref = refs[3]                 # (L+1, 4H)   f32
            out_ref = refs[4]                # (B, 1)      f32
        else:
            wrest_ref = None
            pb_ref = refs[2]
            out_ref = refs[3]

        # ---- Hoisted layer-0 input projection for the whole sequence -------
        # (T*B, IP) x (IP, 4H); layer-0 bias (incl. b_hn in the n_hid column)
        # is fully folded into this matmul's epilogue -> no per-step bias add.
        w_in0 = w0_ref[0:IP, :]
        w_rec0 = w0_ref[IP:IP + H, :]
        b0 = pb_ref[0:1, :]
        gx = jnp.dot(x_ref[...], w_in0,
                     preferred_element_type=jnp.float32) + b0   # (T*B, 4H) f32

        # Hoist recurrent / fused weights and biases out of the time loop.
        w_full = [wrest_ref[l - 1] for l in range(1, L)]         # (2H, 4H) bf16
        b_full = [pb_ref[l:l + 1, :] for l in range(1, L)]       # (1, 4H) f32

        def gate_math(g, h_prev):
            # g columns: [r | z | n_in(+b_in) | n_hid(+b_hn)]
            rz = jax.nn.sigmoid(g[:, 0:H2])          # one fused 2H-wide EUP op
            r = rz[:, 0:H]
            z = rz[:, H:H2]
            n = jnp.tanh(g[:, H2:H3] + r * g[:, H3:H4])
            return (1.0 - z) * n + z * h_prev

        # ---- Wavefront over (layer, time): wave s runs layer l's step s-l ---
        # Adjacent steps in program order belong to different layers and are
        # data-independent, so the scheduler can overlap their MXU/EUP work.
        h_state = [jnp.zeros((B, H), jnp.float32) for _ in range(L)]
        below = [None] * L                   # latest output of each layer
        for s in range(T + L - 1):           # small static T -> full unroll
            new_below = list(below)
            for l in range(L):
                t = s - l
                if 0 <= t < T:
                    h_prev = h_state[l]
                    if l == 0:
                        gx_t = gx[t * B:(t + 1) * B, :]           # (B, 4H)
                        gh = jnp.dot(h_prev.astype(jnp.bfloat16), w_rec0,
                                     preferred_element_type=jnp.float32)
                        g = gx_t + gh
                    else:
                        # Fused input+recurrent matmul: [h_below ; h_prev].
                        xin = jnp.concatenate([below[l - 1], h_prev],
                                              axis=1).astype(jnp.bfloat16)
                        g = jnp.dot(xin, w_full[l - 1],
                                    preferred_element_type=jnp.float32) \
                            + b_full[l - 1]
                    h_new = gate_math(g, h_prev)
                    h_state[l] = h_new
                    new_below[l] = h_new
            below = new_below

        # ---- fc(out[:, -1, :]) as a lane reduction (avoid N=1 MXU matmul) ---
        fc_w = pb_ref[L:L + 1, 0:H]          # (1, H)
        fc_b = pb_ref[L:L + 1, H:H + 1]      # (1, 1)
        out_ref[...] = (jnp.sum(h_state[L - 1] * fc_w, axis=-1, keepdims=True)
                        + fc_b)

    return kernel


def gru_forward(x, layer_params, fc_w, fc_b, hidden_size):
    """x: (B, T, I) float32 (batch_first, like the PyTorch module).

    layer_params: list of torch-layout tuples
        (w_ih (3H, in), w_hh (3H, H), b_ih (3H,), b_hh (3H,)), gate order r|z|n.
    fc_w: (1, H), fc_b: (1,).  Returns (B, 1) float32.
    """
    B, T, I = x.shape
    H = hidden_size
    L = len(layer_params)
    H2, H4 = 2 * H, 4 * H
    IP = _round_up(I, 16)          # bf16 sublane alignment for the input block

    def pack_blocks(w_ih, w_hh, b_ih, b_hh):
        wi = w_ih.T                # (in, 3H)
        wh = w_hh.T                # (H, 3H)
        in_dim = wi.shape[0]
        # input rows:     [W_ir | W_iz | W_in | 0   ]
        # recurrent rows: [W_hr | W_hz | 0    | W_hn]
        w_in = jnp.concatenate([wi, jnp.zeros((in_dim, H), wi.dtype)], axis=1)
        w_rec = jnp.concatenate([wh[:, :H2], jnp.zeros((H, H), wh.dtype),
                                 wh[:, H2:]], axis=1)
        # bias:           [b_ir+b_hr | b_iz+b_hz | b_in | b_hn]
        b = jnp.concatenate([b_ih[:H2] + b_hh[:H2], b_ih[H2:], b_hh[H2:]])
        return w_in, w_rec, b

    # Layer 0: pad the input-weight block rows to IP so both row slices taken
    # inside the kernel are bf16-tile aligned.
    w_in0, w_rec0, b0 = pack_blocks(*layer_params[0])
    if IP > I:
        w_in0 = jnp.concatenate(
            [w_in0, jnp.zeros((IP - I, H4), w_in0.dtype)], axis=0)
    w0 = jnp.concatenate([w_in0, w_rec0], axis=0).astype(jnp.bfloat16)

    # Layers > 0: one (2H, 4H) fused [input ; recurrent] matrix per layer.
    w_rest = None
    biases = [b0]
    if L > 1:
        mats = []
        for p in layer_params[1:]:
            w_in, w_rec, b = pack_blocks(*p)
            mats.append(jnp.concatenate([w_in, w_rec], axis=0))
            biases.append(b)
        w_rest = jnp.stack(mats, axis=0).astype(jnp.bfloat16)

    # Biases + fc packed into a single f32 array:
    #   rows 0..L-1 = per-layer packed biases, row L = [fc_w | fc_b | 0].
    fc_row = jnp.concatenate([fc_w.reshape(H), fc_b.reshape(1),
                              jnp.zeros((H4 - H - 1,), jnp.float32)])
    pb = jnp.stack(biases + [fc_row], axis=0).astype(jnp.float32)

    # Time-major rows (row index = t*B + b), input columns zero-padded to IP.
    x2 = jnp.transpose(x, (1, 0, 2)).reshape(T * B, I)
    if IP > I:
        x2 = jnp.concatenate([x2, jnp.zeros((T * B, IP - I), x2.dtype)], axis=1)
    x2 = x2.astype(jnp.bfloat16)

    inputs = [x2, w0] + ([w_rest] if L > 1 else []) + [pb]
    kernel = _make_gru_kernel(L, H, T, B, IP)
    return pl.pallas_call(
        kernel,
        out_shape=jax.ShapeDtypeStruct((B, 1), jnp.float32),
        in_specs=[pl.BlockSpec(memory_space=pltpu.MemorySpace.VMEM)]
        * len(inputs),
        out_specs=pl.BlockSpec(memory_space=pltpu.MemorySpace.VMEM),
    )(*inputs)


def _gru_reference(x, raw_params, fc_w_raw, fc_b_raw, H):
    """Pure-JAX f32 reference matching torch.nn.GRU (inference) + Linear."""
    B, T, _ = x.shape
    h_in = x
    for (w_ih, w_hh, b_ih, b_hh) in raw_params:
        h = jnp.zeros((B, H), jnp.float32)
        outs = []
        for t in range(T):
            x_t = h_in[:, t, :]
            gi = x_t @ w_ih.T + b_ih          # (B, 3H)
            gh = h @ w_hh.T + b_hh            # (B, 3H)
            r = jax.nn.sigmoid(gi[:, 0:H] + gh[:, 0:H])
            z = jax.nn.sigmoid(gi[:, H:2 * H] + gh[:, H:2 * H])
            n = jnp.tanh(gi[:, 2 * H:3 * H] + r * gh[:, 2 * H:3 * H])
            h = (1.0 - z) * n + z * h
            outs.append(h)
        h_in = jnp.stack(outs, axis=1)
    return h_in[:, -1, :] @ fc_w_raw.T + fc_b_raw


if __name__ == "__main__":
    # Small, PyTorch-module-consistent sizes.
    input_size = 8
    hidden_size = 32
    num_layers = 2
    batch = 8
    seq = 8

    key = jax.random.PRNGKey(0)
    scale = 1.0 / np.sqrt(hidden_size)
    H = hidden_size

    raw_params = []      # torch-layout params (3H, in)/(3H, H)/(3H,)
    in_dim = input_size
    for _ in range(num_layers):
        key, k1, k2, k3, k4 = jax.random.split(key, 5)
        w_ih = jax.random.uniform(k1, (3 * H, in_dim),
                                  jnp.float32, -scale, scale)
        w_hh = jax.random.uniform(k2, (3 * H, H),
                                  jnp.float32, -scale, scale)
        b_ih = jax.random.uniform(k3, (3 * H,), jnp.float32, -scale, scale)
        b_hh = jax.random.uniform(k4, (3 * H,), jnp.float32, -scale, scale)
        raw_params.append((w_ih, w_hh, b_ih, b_hh))
        in_dim = hidden_size

    key, kf1, kf2, kx = jax.random.split(key, 4)
    fc_w = jax.random.uniform(kf1, (1, H), jnp.float32, -scale, scale)
    fc_b = jax.random.uniform(kf2, (1,), jnp.float32, -scale, scale)

    x = jax.random.normal(kx, (batch, seq, input_size), jnp.float32)

    out = gru_forward(x, raw_params, fc_w, fc_b, hidden_size)
    out = jax.block_until_ready(out)

    ref = _gru_reference(x, raw_params, fc_w, fc_b, hidden_size)
    assert out.shape == (batch, 1)
    # Tolerance loosened because matmul operands are bf16 (f32 accumulation,
    # f32 gate math); the reference is pure f32.
    np.testing.assert_allclose(np.asarray(out), np.asarray(ref),
                               rtol=2e-2, atol=2e-2)
    print("KERNEL_OK")
</pallas_src>

<mosaic_0001>
module attributes {stable_mosaic.version = 11 : i64} {
  func.func @kernel(%arg0: memref<64x16xbf16, #tpu.memory_space<vmem>>, %arg1: memref<48x128xbf16, #tpu.memory_space<vmem>>, %arg2: memref<1x64x128xbf16, #tpu.memory_space<vmem>>, %arg3: memref<3x128xf32, #tpu.memory_space<vmem>>, %arg4: memref<8x1xf32, #tpu.memory_space<vmem>>) attributes {dimension_semantics = [], scalar_prefetch = 0 : i64, scratch_operands = 0 : i64, tpu.core_type = #tpu.core_type<tc>} {
    %c0 = arith.constant 0 : index
    %c0_0 = arith.constant 0 : index
    %0 = vector.load %arg1[%c0, %c0_0] : memref<48x128xbf16, #tpu.memory_space<vmem>>, vector<16x128xbf16>
    %c16 = arith.constant 16 : index
    %c0_1 = arith.constant 0 : index
    %1 = vector.load %arg1[%c16, %c0_1] : memref<48x128xbf16, #tpu.memory_space<vmem>>, vector<32x128xbf16>
    %c0_2 = arith.constant 0 : index
    %c0_3 = arith.constant 0 : index
    %2 = vector.load %arg3[%c0_2, %c0_3] : memref<3x128xf32, #tpu.memory_space<vmem>>, vector<1x128xf32>
    %c0_4 = arith.constant 0 : index
    %c0_5 = arith.constant 0 : index
    %3 = vector.load %arg0[%c0_4, %c0_5] : memref<64x16xbf16, #tpu.memory_space<vmem>>, vector<64x16xbf16>
    %cst = arith.constant dense<0.000000e+00> : vector<64x128xf32>
    %4 = tpu.matmul %3, %0, %cst {dimension_numbers = #tpu.dot_dimension_numbers<[1], [0], [0], [1], [0, 0, 1, 1], [], []>} : vector<64x16xbf16>, vector<16x128xbf16>, vector<64x128xf32> -> vector<64x128xf32>
    %5 = vector.broadcast %2 : vector<1x128xf32> to vector<64x128xf32>
    %6 = arith.addf %4, %5 : vector<64x128xf32>
    %c0_6 = arith.constant 0 : index
    %c0_7 = arith.constant 0 : index
    %c0_8 = arith.constant 0 : index
    %7 = vector.load %arg2[%c0_6, %c0_7, %c0_8] : memref<1x64x128xbf16, #tpu.memory_space<vmem>>, vector<1x64x128xbf16>
    %8 = vector.shape_cast %7 : vector<1x64x128xbf16> to vector<64x128xbf16>
    %c1 = arith.constant 1 : index
    %c0_9 = arith.constant 0 : index
    %9 = vector.load %arg3[%c1, %c0_9] : memref<3x128xf32, #tpu.memory_space<vmem>>, vector<1x128xf32>
    %cst_10 = arith.constant 0.000000e+00 : f32
    %10 = vector.broadcast %cst_10 : f32 to vector<8x32xf32>
    %cst_11 = arith.constant 0.000000e+00 : f32
    %11 = vector.broadcast %cst_11 : f32 to vector<8x32xf32>
    %12 = vector.extract_strided_slice %6 {offsets = [0, 0], sizes = [8, 128], strides = [1, 1]} : vector<64x128xf32> to vector<8x128xf32>
    %13 = arith.truncf %10 : vector<8x32xf32> to vector<8x32xbf16>
    %cst_12 = arith.constant dense<0.000000e+00> : vector<8x128xf32>
    %14 = tpu.matmul %13, %1, %cst_12 {dimension_numbers = #tpu.dot_dimension_numbers<[1], [0], [0], [1], [0, 0, 1, 1], [], []>} : vector<8x32xbf16>, vector<32x128xbf16>, vector<8x128xf32> -> vector<8x128xf32>
    %15 = arith.addf %12, %14 : vector<8x128xf32>
    %16 = vector.extract_strided_slice %15 {offsets = [0, 0], sizes = [8, 64], strides = [1, 1]} : vector<8x128xf32> to vector<8x64xf32>
    %17 = arith.negf %16 : vector<8x64xf32>
    %18 = math.exp %17 : vector<8x64xf32>
    %cst_13 = arith.constant 1.000000e+00 : f32
    %19 = vector.broadcast %cst_13 : f32 to vector<8x64xf32>
    %20 = arith.addf %19, %18 : vector<8x64xf32>
    %21 = arith.divf %19, %20 : vector<8x64xf32>
    %22 = vector.extract_strided_slice %21 {offsets = [0, 0], sizes = [8, 32], strides = [1, 1]} : vector<8x64xf32> to vector<8x32xf32>
    %23 = vector.extract_strided_slice %21 {offsets = [0, 32], sizes = [8, 32], strides = [1, 1]} : vector<8x64xf32> to vector<8x32xf32>
    %24 = vector.extract_strided_slice %15 {offsets = [0, 64], sizes = [8, 32], strides = [1, 1]} : vector<8x128xf32> to vector<8x32xf32>
    %25 = vector.extract_strided_slice %15 {offsets = [0, 96], sizes = [8, 32], strides = [1, 1]} : vector<8x128xf32> to vector<8x32xf32>
    %26 = arith.mulf %22, %25 : vector<8x32xf32>
    %27 = arith.addf %24, %26 : vector<8x32xf32>
    %28 = math.tanh %27 : vector<8x32xf32>
    %cst_14 = arith.constant 1.000000e+00 : f32
    %29 = vector.broadcast %cst_14 : f32 to vector<8x32xf32>
    %30 = arith.subf %29, %23 : vector<8x32xf32>
    %31 = arith.mulf %30, %28 : vector<8x32xf32>
    %32 = arith.mulf %23, %10 : vector<8x32xf32>
    %33 = arith.addf %31, %32 : vector<8x32xf32>
    %34 = vector.extract_strided_slice %6 {offsets = [8, 0], sizes = [8, 128], strides = [1, 1]} : vector<64x128xf32> to vector<8x128xf32>
    %35 = arith.truncf %33 : vector<8x32xf32> to vector<8x32xbf16>
    %cst_15 = arith.constant dense<0.000000e+00> : vector<8x128xf32>
    %36 = tpu.matmul %35, %1, %cst_15 {dimension_numbers = #tpu.dot_dimension_numbers<[1], [0], [0], [1], [0, 0, 1, 1], [], []>} : vector<8x32xbf16>, vector<32x128xbf16>, vector<8x128xf32> -> vector<8x128xf32>
    %37 = arith.addf %34, %36 : vector<8x128xf32>
    %38 = vector.extract_strided_slice %37 {offsets = [0, 0], sizes = [8, 64], strides = [1, 1]} : vector<8x128xf32> to vector<8x64xf32>
    %39 = arith.negf %38 : vector<8x64xf32>
    %40 = math.exp %39 : vector<8x64xf32>
    %cst_16 = arith.constant 1.000000e+00 : f32
    %41 = vector.broadcast %cst_16 : f32 to vector<8x64xf32>
    %42 = arith.addf %41, %40 : vector<8x64xf32>
    %43 = arith.divf %41, %42 : vector<8x64xf32>
    %44 = vector.extract_strided_slice %43 {offsets = [0, 0], sizes = [8, 32], strides = [1, 1]} : vector<8x64xf32> to vector<8x32xf32>
    %45 = vector.extract_strided_slice %43 {offsets = [0, 32], sizes = [8, 32], strides = [1, 1]} : vector<8x64xf32> to vector<8x32xf32>
    %46 = vector.extract_strided_slice %37 {offsets = [0, 64], sizes = [8, 32], strides = [1, 1]} : vector<8x128xf32> to vector<8x32xf32>
    %47 = vector.extract_strided_slice %37 {offsets = [0, 96], sizes = [8, 32], strides = [1, 1]} : vector<8x128xf32> to vector<8x32xf32>
    %48 = arith.mulf %44, %47 : vector<8x32xf32>
    %49 = arith.addf %46, %48 : vector<8x32xf32>
    %50 = math.tanh %49 : vector<8x32xf32>
    %cst_17 = arith.constant 1.000000e+00 : f32
    %51 = vector.broadcast %cst_17 : f32 to vector<8x32xf32>
    %52 = arith.subf %51, %45 : vector<8x32xf32>
    %53 = arith.mulf %52, %50 : vector<8x32xf32>
    %54 = arith.mulf %45, %33 : vector<8x32xf32>
    %55 = arith.addf %53, %54 : vector<8x32xf32>
    %56 = tpu.concatenate %33, %11 in 1 : vector<8x32xf32>, vector<8x32xf32> -> vector<8x64xf32>
    %57 = arith.truncf %56 : vector<8x64xf32> to vector<8x64xbf16>
    %cst_18 = arith.constant dense<0.000000e+00> : vector<8x128xf32>
    %58 = tpu.matmul %57, %8, %cst_18 {dimension_numbers = #tpu.dot_dimension_numbers<[1], [0], [0], [1], [0, 0, 1, 1], [], []>} : vector<8x64xbf16>, vector<64x128xbf16>, vector<8x128xf32> -> vector<8x128xf32>
    %59 = vector.broadcast %9 : vector<1x128xf32> to vector<8x128xf32>
    %60 = arith.addf %58, %59 : vector<8x128xf32>
    %61 = vector.extract_strided_slice %60 {offsets = [0, 0], sizes = [8, 64], strides = [1, 1]} : vector<8x128xf32> to vector<8x64xf32>
    %62 = arith.negf %61 : vector<8x64xf32>
    %63 = math.exp %62 : vector<8x64xf32>
    %cst_19 = arith.constant 1.000000e+00 : f32
    %64 = vector.broadcast %cst_19 : f32 to vector<8x64xf32>
    %65 = arith.addf %64, %63 : vector<8x64xf32>
    %66 = arith.divf %64, %65 : vector<8x64xf32>
    %67 = vector.extract_strided_slice %66 {offsets = [0, 0], sizes = [8, 32], strides = [1, 1]} : vector<8x64xf32> to vector<8x32xf32>
    %68 = vector.extract_strided_slice %66 {offsets = [0, 32], sizes = [8, 32], strides = [1, 1]} : vector<8x64xf32> to vector<8x32xf32>
    %69 = vector.extract_strided_slice %60 {offsets = [0, 64], sizes = [8, 32], strides = [1, 1]} : vector<8x128xf32> to vector<8x32xf32>
    %70 = vector.extract_strided_slice %60 {offsets = [0, 96], sizes = [8, 32], strides = [1, 1]} : vector<8x128xf32> to vector<8x32xf32>
    %71 = arith.mulf %67, %70 : vector<8x32xf32>
    %72 = arith.addf %69, %71 : vector<8x32xf32>
    %73 = math.tanh %72 : vector<8x32xf32>
    %cst_20 = arith.constant 1.000000e+00 : f32
    %74 = vector.broadcast %cst_20 : f32 to vector<8x32xf32>
    %75 = arith.subf %74, %68 : vector<8x32xf32>
    %76 = arith.mulf %75, %73 : vector<8x32xf32>
    %77 = arith.mulf %68, %11 : vector<8x32xf32>
    %78 = arith.addf %76, %77 : vector<8x32xf32>
    %79 = vector.extract_strided_slice %6 {offsets = [16, 0], sizes = [8, 128], strides = [1, 1]} : vector<64x128xf32> to vector<8x128xf32>
    %80 = arith.truncf %55 : vector<8x32xf32> to vector<8x32xbf16>
    %cst_21 = arith.constant dense<0.000000e+00> : vector<8x128xf32>
    %81 = tpu.matmul %80, %1, %cst_21 {dimension_numbers = #tpu.dot_dimension_numbers<[1], [0], [0], [1], [0, 0, 1, 1], [], []>} : vector<8x32xbf16>, vector<32x128xbf16>, vector<8x128xf32> -> vector<8x128xf32>
    %82 = arith.addf %79, %81 : vector<8x128xf32>
    %83 = vector.extract_strided_slice %82 {offsets = [0, 0], sizes = [8, 64], strides = [1, 1]} : vector<8x128xf32> to vector<8x64xf32>
    %84 = arith.negf %83 : vector<8x64xf32>
    %85 = math.exp %84 : vector<8x64xf32>
    %cst_22 = arith.constant 1.000000e+00 : f32
    %86 = vector.broadcast %cst_22 : f32 to vector<8x64xf32>
    %87 = arith.addf %86, %85 : vector<8x64xf32>
    %88 = arith.divf %86, %87 : vector<8x64xf32>
    %89 = vector.extract_strided_slice %88 {offsets = [0, 0], sizes = [8, 32], strides = [1, 1]} : vector<8x64xf32> to vector<8x32xf32>
    %90 = vector.extract_strided_slice %88 {offsets = [0, 32], sizes = [8, 32], strides = [1, 1]} : vector<8x64xf32> to vector<8x32xf32>
    %91 = vector.extract_strided_slice %82 {offsets = [0, 64], sizes = [8, 32], strides = [1, 1]} : vector<8x128xf32> to vector<8x32xf32>
    %92 = vector.extract_strided_slice %82 {offsets = [0, 96], sizes = [8, 32], strides = [1, 1]} : vector<8x128xf32> to vector<8x32xf32>
    %93 = arith.mulf %89, %92 : vector<8x32xf32>
    %94 = arith.addf %91, %93 : vector<8x32xf32>
    %95 = math.tanh %94 : vector<8x32xf32>
    %cst_23 = arith.constant 1.000000e+00 : f32
    %96 = vector.broadcast %cst_23 : f32 to vector<8x32xf32>
    %97 = arith.subf %96, %90 : vector<8x32xf32>
    %98 = arith.mulf %97, %95 : vector<8x32xf32>
    %99 = arith.mulf %90, %55 : vector<8x32xf32>
    %100 = arith.addf %98, %99 : vector<8x32xf32>
    %101 = tpu.concatenate %55, %78 in 1 : vector<8x32xf32>, vector<8x32xf32> -> vector<8x64xf32>
    %102 = arith.truncf %101 : vector<8x64xf32> to vector<8x64xbf16>
    %cst_24 = arith.constant dense<0.000000e+00> : vector<8x128xf32>
    %103 = tpu.matmul %102, %8, %cst_24 {dimension_numbers = #tpu.dot_dimension_numbers<[1], [0], [0], [1], [0, 0, 1, 1], [], []>} : vector<8x64xbf16>, vector<64x128xbf16>, vector<8x128xf32> -> vector<8x128xf32>
    %104 = vector.broadcast %9 : vector<1x128xf32> to vector<8x128xf32>
    %105 = arith.addf %103, %104 : vector<8x128xf32>
    %106 = vector.extract_strided_slice %105 {offsets = [0, 0], sizes = [8, 64], strides = [1, 1]} : vector<8x128xf32> to vector<8x64xf32>
    %107 = arith.negf %106 : vector<8x64xf32>
    %108 = math.exp %107 : vector<8x64xf32>
    %cst_25 = arith.constant 1.000000e+00 : f32
    %109 = vector.broadcast %cst_25 : f32 to vector<8x64xf32>
    %110 = arith.addf %109, %108 : vector<8x64xf32>
    %111 = arith.divf %109, %110 : vector<8x64xf32>
    %112 = vector.extract_strided_slice %111 {offsets = [0, 0], sizes = [8, 32], strides = [1, 1]} : vector<8x64xf32> to vector<8x32xf32>
    %113 = vector.extract_strided_slice %111 {offsets = [0, 32], sizes = [8, 32], strides = [1, 1]} : vector<8x64xf32> to vector<8x32xf32>
    %114 = vector.extract_strided_slice %105 {offsets = [0, 64], sizes = [8, 32], strides = [1, 1]} : vector<8x128xf32> to vector<8x32xf32>
    %115 = vector.extract_strided_slice %105 {offsets = [0, 96], sizes = [8, 32], strides = [1, 1]} : vector<8x128xf32> to vector<8x32xf32>
    %116 = arith.mulf %112, %115 : vector<8x32xf32>
    %117 = arith.addf %114, %116 : vector<8x32xf32>
    %118 = math.tanh %117 : vector<8x32xf32>
    %cst_26 = arith.constant 1.000000e+00 : f32
    %119 = vector.broadcast %cst_26 : f32 to vector<8x32xf32>
    %120 = arith.subf %119, %113 : vector<8x32xf32>
    %121 = arith.mulf %120, %118 : vector<8x32xf32>
    %122 = arith.mulf %113, %78 : vector<8x32xf32>
    %123 = arith.addf %121, %122 : vector<8x32xf32>
    %124 = vector.extract_strided_slice %6 {offsets = [24, 0], sizes = [8, 128], strides = [1, 1]} : vector<64x128xf32> to vector<8x128xf32>
    %125 = arith.truncf %100 : vector<8x32xf32> to vector<8x32xbf16>
    %cst_27 = arith.constant dense<0.000000e+00> : vector<8x128xf32>
    %126 = tpu.matmul %125, %1, %cst_27 {dimension_numbers = #tpu.dot_dimension_numbers<[1], [0], [0], [1], [0, 0, 1, 1], [], []>} : vector<8x32xbf16>, vector<32x128xbf16>, vector<8x128xf32> -> vector<8x128xf32>
    %127 = arith.addf %124, %126 : vector<8x128xf32>
    %128 = vector.extract_strided_slice %127 {offsets = [0, 0], sizes = [8, 64], strides = [1, 1]} : vector<8x128xf32> to vector<8x64xf32>
    %129 = arith.negf %128 : vector<8x64xf32>
    %130 = math.exp %129 : vector<8x64xf32>
    %cst_28 = arith.constant 1.000000e+00 : f32
    %131 = vector.broadcast %cst_28 : f32 to vector<8x64xf32>
    %132 = arith.addf %131, %130 : vector<8x64xf32>
    %133 = arith.divf %131, %132 : vector<8x64xf32>
    %134 = vector.extract_strided_slice %133 {offsets = [0, 0], sizes = [8, 32], strides = [1, 1]} : vector<8x64xf32> to vector<8x32xf32>
    %135 = vector.extract_strided_slice %133 {offsets = [0, 32], sizes = [8, 32], strides = [1, 1]} : vector<8x64xf32> to vector<8x32xf32>
    %136 = vector.extract_strided_slice %127 {offsets = [0, 64], sizes = [8, 32], strides = [1, 1]} : vector<8x128xf32> to vector<8x32xf32>
    %137 = vector.extract_strided_slice %127 {offsets = [0, 96], sizes = [8, 32], strides = [1, 1]} : vector<8x128xf32> to vector<8x32xf32>
    %138 = arith.mulf %134, %137 : vector<8x32xf32>
    %139 = arith.addf %136, %138 : vector<8x32xf32>
    %140 = math.tanh %139 : vector<8x32xf32>
    %cst_29 = arith.constant 1.000000e+00 : f32
    %141 = vector.broadcast %cst_29 : f32 to vector<8x32xf32>
    %142 = arith.subf %141, %135 : vector<8x32xf32>
    %143 = arith.mulf %142, %140 : vector<8x32xf32>
    %144 = arith.mulf %135, %100 : vector<8x32xf32>
    %145 = arith.addf %143, %144 : vector<8x32xf32>
    %146 = tpu.concatenate %100, %123 in 1 : vector<8x32xf32>, vector<8x32xf32> -> vector<8x64xf32>
    %147 = arith.truncf %146 : vector<8x64xf32> to vector<8x64xbf16>
    %cst_30 = arith.constant dense<0.000000e+00> : vector<8x128xf32>
    %148 = tpu.matmul %147, %8, %cst_30 {dimension_numbers = #tpu.dot_dimension_numbers<[1], [0], [0], [1], [0, 0, 1, 1], [], []>} : vector<8x64xbf16>, vector<64x128xbf16>, vector<8x128xf32> -> vector<8x128xf32>
    %149 = vector.broadcast %9 : vector<1x128xf32> to vector<8x128xf32>
    %150 = arith.addf %148, %149 : vector<8x128xf32>
    %151 = vector.extract_strided_slice %150 {offsets = [0, 0], sizes = [8, 64], strides = [1, 1]} : vector<8x128xf32> to vector<8x64xf32>
    %152 = arith.negf %151 : vector<8x64xf32>
    %153 = math.exp %152 : vector<8x64xf32>
    %cst_31 = arith.constant 1.000000e+00 : f32
    %154 = vector.broadcast %cst_31 : f32 to vector<8x64xf32>
    %155 = arith.addf %154, %153 : vector<8x64xf32>
    %156 = arith.divf %154, %155 : vector<8x64xf32>
    %157 = vector.extract_strided_slice %156 {offsets = [0, 0], sizes = [8, 32], strides = [1, 1]} : vector<8x64xf32> to vector<8x32xf32>
    %158 = vector.extract_strided_slice %156 {offsets = [0, 32], sizes = [8, 32], strides = [1, 1]} : vector<8x64xf32> to vector<8x32xf32>
    %159 = vector.extract_strided_slice %150 {offsets = [0, 64], sizes = [8, 32], strides = [1, 1]} : vector<8x128xf32> to vector<8x32xf32>
    %160 = vector.extract_strided_slice %150 {offsets = [0, 96], sizes = [8, 32], strides = [1, 1]} : vector<8x128xf32> to vector<8x32xf32>
    %161 = arith.mulf %157, %160 : vector<8x32xf32>
    %162 = arith.addf %159, %161 : vector<8x32xf32>
    %163 = math.tanh %162 : vector<8x32xf32>
    %cst_32 = arith.constant 1.000000e+00 : f32
    %164 = vector.broadcast %cst_32 : f32 to vector<8x32xf32>
    %165 = arith.subf %164, %158 : vector<8x32xf32>
    %166 = arith.mulf %165, %163 : vector<8x32xf32>
    %167 = arith.mulf %158, %123 : vector<8x32xf32>
    %168 = arith.addf %166, %167 : vector<8x32xf32>
    %169 = vector.extract_strided_slice %6 {offsets = [32, 0], sizes = [8, 128], strides = [1, 1]} : vector<64x128xf32> to vector<8x128xf32>
    %170 = arith.truncf %145 : vector<8x32xf32> to vector<8x32xbf16>
    %cst_33 = arith.constant dense<0.000000e+00> : vector<8x128xf32>
    %171 = tpu.matmul %170, %1, %cst_33 {dimension_numbers = #tpu.dot_dimension_numbers<[1], [0], [0], [1], [0, 0, 1, 1], [], []>} : vector<8x32xbf16>, vector<32x128xbf16>, vector<8x128xf32> -> vector<8x128xf32>
    %172 = arith.addf %169, %171 : vector<8x128xf32>
    %173 = vector.extract_strided_slice %172 {offsets = [0, 0], sizes = [8, 64], strides = [1, 1]} : vector<8x128xf32> to vector<8x64xf32>
    %174 = arith.negf %173 : vector<8x64xf32>
    %175 = math.exp %174 : vector<8x64xf32>
    %cst_34 = arith.constant 1.000000e+00 : f32
    %176 = vector.broadcast %cst_34 : f32 to vector<8x64xf32>
    %177 = arith.addf %176, %175 : vector<8x64xf32>
    %178 = arith.divf %176, %177 : vector<8x64xf32>
    %179 = vector.extract_strided_slice %178 {offsets = [0, 0], sizes = [8, 32], strides = [1, 1]} : vector<8x64xf32> to vector<8x32xf32>
    %180 = vector.extract_strided_slice %178 {offsets = [0, 32], sizes = [8, 32], strides = [1, 1]} : vector<8x64xf32> to vector<8x32xf32>
    %181 = vector.extract_strided_slice %172 {offsets = [0, 64], sizes = [8, 32], strides = [1, 1]} : vector<8x128xf32> to vector<8x32xf32>
    %182 = vector.extract_strided_slice %172 {offsets = [0, 96], sizes = [8, 32], strides = [1, 1]} : vector<8x128xf32> to vector<8x32xf32>
    %183 = arith.mulf %179, %182 : vector<8x32xf32>
    %184 = arith.addf %181, %183 : vector<8x32xf32>
    %185 = math.tanh %184 : vector<8x32xf32>
    %cst_35 = arith.constant 1.000000e+00 : f32
    %186 = vector.broadcast %cst_35 : f32 to vector<8x32xf32>
    %187 = arith.subf %186, %180 : vector<8x32xf32>
    %188 = arith.mulf %187, %185 : vector<8x32xf32>
    %189 = arith.mulf %180, %145 : vector<8x32xf32>
    %190 = arith.addf %188, %189 : vector<8x32xf32>
    %191 = tpu.concatenate %145, %168 in 1 : vector<8x32xf32>, vector<8x32xf32> -> vector<8x64xf32>
    %192 = arith.truncf %191 : vector<8x64xf32> to vector<8x64xbf16>
    %cst_36 = arith.constant dense<0.000000e+00> : vector<8x128xf32>
    %193 = tpu.matmul %192, %8, %cst_36 {dimension_numbers = #tpu.dot_dimension_numbers<[1], [0], [0], [1], [0, 0, 1, 1], [], []>} : vector<8x64xbf16>, vector<64x128xbf16>, vector<8x128xf32> -> vector<8x128xf32>
    %194 = vector.broadcast %9 : vector<1x128xf32> to vector<8x128xf32>
    %195 = arith.addf %193, %194 : vector<8x128xf32>
    %196 = vector.extract_strided_slice %195 {offsets = [0, 0], sizes = [8, 64], strides = [1, 1]} : vector<8x128xf32> to vector<8x64xf32>
    %197 = arith.negf %196 : vector<8x64xf32>
    %198 = math.exp %197 : vector<8x64xf32>
    %cst_37 = arith.constant 1.000000e+00 : f32
    %199 = vector.broadcast %cst_37 : f32 to vector<8x64xf32>
    %200 = arith.addf %199, %198 : vector<8x64xf32>
    %201 = arith.divf %199, %200 : vector<8x64xf32>
    %202 = vector.extract_strided_slice %201 {offsets = [0, 0], sizes = [8, 32], strides = [1, 1]} : vector<8x64xf32> to vector<8x32xf32>
    %203 = vector.extract_strided_slice %201 {offsets = [0, 32], sizes = [8, 32], strides = [1, 1]} : vector<8x64xf32> to vector<8x32xf32>
    %204 = vector.extract_strided_slice %195 {offsets = [0, 64], sizes = [8, 32], strides = [1, 1]} : vector<8x128xf32> to vector<8x32xf32>
    %205 = vector.extract_strided_slice %195 {offsets = [0, 96], sizes = [8, 32], strides = [1, 1]} : vector<8x128xf32> to vector<8x32xf32>
    %206 = arith.mulf %202, %205 : vector<8x32xf32>
    %207 = arith.addf %204, %206 : vector<8x32xf32>
    %208 = math.tanh %207 : vector<8x32xf32>
    %cst_38 = arith.constant 1.000000e+00 : f32
    %209 = vector.broadcast %cst_38 : f32 to vector<8x32xf32>
    %210 = arith.subf %209, %203 : vector<8x32xf32>
    %211 = arith.mulf %210, %208 : vector<8x32xf32>
    %212 = arith.mulf %203, %168 : vector<8x32xf32>
    %213 = arith.addf %211, %212 : vector<8x32xf32>
    %214 = vector.extract_strided_slice %6 {offsets = [40, 0], sizes = [8, 128], strides = [1, 1]} : vector<64x128xf32> to vector<8x128xf32>
    %215 = arith.truncf %190 : vector<8x32xf32> to vector<8x32xbf16>
    %cst_39 = arith.constant dense<0.000000e+00> : vector<8x128xf32>
    %216 = tpu.matmul %215, %1, %cst_39 {dimension_numbers = #tpu.dot_dimension_numbers<[1], [0], [0], [1], [0, 0, 1, 1], [], []>} : vector<8x32xbf16>, vector<32x128xbf16>, vector<8x128xf32> -> vector<8x128xf32>
    %217 = arith.addf %214, %216 : vector<8x128xf32>
    %218 = vector.extract_strided_slice %217 {offsets = [0, 0], sizes = [8, 64], strides = [1, 1]} : vector<8x128xf32> to vector<8x64xf32>
    %219 = arith.negf %218 : vector<8x64xf32>
    %220 = math.exp %219 : vector<8x64xf32>
    %cst_40 = arith.constant 1.000000e+00 : f32
    %221 = vector.broadcast %cst_40 : f32 to vector<8x64xf32>
    %222 = arith.addf %221, %220 : vector<8x64xf32>
    %223 = arith.divf %221, %222 : vector<8x64xf32>
    %224 = vector.extract_strided_slice %223 {offsets = [0, 0], sizes = [8, 32], strides = [1, 1]} : vector<8x64xf32> to vector<8x32xf32>
    %225 = vector.extract_strided_slice %223 {offsets = [0, 32], sizes = [8, 32], strides = [1, 1]} : vector<8x64xf32> to vector<8x32xf32>
    %226 = vector.extract_strided_slice %217 {offsets = [0, 64], sizes = [8, 32], strides = [1, 1]} : vector<8x128xf32> to vector<8x32xf32>
    %227 = vector.extract_strided_slice %217 {offsets = [0, 96], sizes = [8, 32], strides = [1, 1]} : vector<8x128xf32> to vector<8x32xf32>
    %228 = arith.mulf %224, %227 : vector<8x32xf32>
    %229 = arith.addf %226, %228 : vector<8x32xf32>
    %230 = math.tanh %229 : vector<8x32xf32>
    %cst_41 = arith.constant 1.000000e+00 : f32
    %231 = vector.broadcast %cst_41 : f32 to vector<8x32xf32>
    %232 = arith.subf %231, %225 : vector<8x32xf32>
    %233 = arith.mulf %232, %230 : vector<8x32xf32>
    %234 = arith.mulf %225, %190 : vector<8x32xf32>
    %235 = arith.addf %233, %234 : vector<8x32xf32>
    %236 = tpu.concatenate %190, %213 in 1 : vector<8x32xf32>, vector<8x32xf32> -> vector<8x64xf32>
    %237 = arith.truncf %236 : vector<8x64xf32> to vector<8x64xbf16>
    %cst_42 = arith.constant dense<0.000000e+00> : vector<8x128xf32>
    %238 = tpu.matmul %237, %8, %cst_42 {dimension_numbers = #tpu.dot_dimension_numbers<[1], [0], [0], [1], [0, 0, 1, 1], [], []>} : vector<8x64xbf16>, vector<64x128xbf16>, vector<8x128xf32> -> vector<8x128xf32>
    %239 = vector.broadcast %9 : vector<1x128xf32> to vector<8x128xf32>
    %240 = arith.addf %238, %239 : vector<8x128xf32>
    %241 = vector.extract_strided_slice %240 {offsets = [0, 0], sizes = [8, 64], strides = [1, 1]} : vector<8x128xf32> to vector<8x64xf32>
    %242 = arith.negf %241 : vector<8x64xf32>
    %243 = math.exp %242 : vector<8x64xf32>
    %cst_43 = arith.constant 1.000000e+00 : f32
    %244 = vector.broadcast %cst_43 : f32 to vector<8x64xf32>
    %245 = arith.addf %244, %243 : vector<8x64xf32>
    %246 = arith.divf %244, %245 : vector<8x64xf32>
    %247 = vector.extract_strided_slice %246 {offsets = [0, 0], sizes = [8, 32], strides = [1, 1]} : vector<8x64xf32> to vector<8x32xf32>
    %248 = vector.extract_strided_slice %246 {offsets = [0, 32], sizes = [8, 32], strides = [1, 1]} : vector<8x64xf32> to vector<8x32xf32>
    %249 = vector.extract_strided_slice %240 {offsets = [0, 64], sizes = [8, 32], strides = [1, 1]} : vector<8x128xf32> to vector<8x32xf32>
    %250 = vector.extract_strided_slice %240 {offsets = [0, 96], sizes = [8, 32], strides = [1, 1]} : vector<8x128xf32> to vector<8x32xf32>
    %251 = arith.mulf %247, %250 : vector<8x32xf32>
    %252 = arith.addf %249, %251 : vector<8x32xf32>
    %253 = math.tanh %252 : vector<8x32xf32>
    %cst_44 = arith.constant 1.000000e+00 : f32
    %254 = vector.broadcast %cst_44 : f32 to vector<8x32xf32>
    %255 = arith.subf %254, %248 : vector<8x32xf32>
    %256 = arith.mulf %255, %253 : vector<8x32xf32>
    %257 = arith.mulf %248, %213 : vector<8x32xf32>
    %258 = arith.addf %256, %257 : vector<8x32xf32>
    %259 = vector.extract_strided_slice %6 {offsets = [48, 0], sizes = [8, 128], strides = [1, 1]} : vector<64x128xf32> to vector<8x128xf32>
    %260 = arith.truncf %235 : vector<8x32xf32> to vector<8x32xbf16>
    %cst_45 = arith.constant dense<0.000000e+00> : vector<8x128xf32>
    %261 = tpu.matmul %260, %1, %cst_45 {dimension_numbers = #tpu.dot_dimension_numbers<[1], [0], [0], [1], [0, 0, 1, 1], [], []>} : vector<8x32xbf16>, vector<32x128xbf16>, vector<8x128xf32> -> vector<8x128xf32>
    %262 = arith.addf %259, %261 : vector<8x128xf32>
    %263 = vector.extract_strided_slice %262 {offsets = [0, 0], sizes = [8, 64], strides = [1, 1]} : vector<8x128xf32> to vector<8x64xf32>
    %264 = arith.negf %263 : vector<8x64xf32>
    %265 = math.exp %264 : vector<8x64xf32>
    %cst_46 = arith.constant 1.000000e+00 : f32
    %266 = vector.broadcast %cst_46 : f32 to vector<8x64xf32>
    %267 = arith.addf %266, %265 : vector<8x64xf32>
    %268 = arith.divf %266, %267 : vector<8x64xf32>
    %269 = vector.extract_strided_slice %268 {offsets = [0, 0], sizes = [8, 32], strides = [1, 1]} : vector<8x64xf32> to vector<8x32xf32>
    %270 = vector.extract_strided_slice %268 {offsets = [0, 32], sizes = [8, 32], strides = [1, 1]} : vector<8x64xf32> to vector<8x32xf32>
    %271 = vector.extract_strided_slice %262 {offsets = [0, 64], sizes = [8, 32], strides = [1, 1]} : vector<8x128xf32> to vector<8x32xf32>
    %272 = vector.extract_strided_slice %262 {offsets = [0, 96], sizes = [8, 32], strides = [1, 1]} : vector<8x128xf32> to vector<8x32xf32>
    %273 = arith.mulf %269, %272 : vector<8x32xf32>
    %274 = arith.addf %271, %273 : vector<8x32xf32>
    %275 = math.tanh %274 : vector<8x32xf32>
    %cst_47 = arith.constant 1.000000e+00 : f32
    %276 = vector.broadcast %cst_47 : f32 to vector<8x32xf32>
    %277 = arith.subf %276, %270 : vector<8x32xf32>
    %278 = arith.mulf %277, %275 : vector<8x32xf32>
    %279 = arith.mulf %270, %235 : vector<8x32xf32>
    %280 = arith.addf %278, %279 : vector<8x32xf32>
    %281 = tpu.concatenate %235, %258 in 1 : vector<8x32xf32>, vector<8x32xf32> -> vector<8x64xf32>
    %282 = arith.truncf %281 : vector<8x64xf32> to vector<8x64xbf16>
    %cst_48 = arith.constant dense<0.000000e+00> : vector<8x128xf32>
    %283 = tpu.matmul %282, %8, %cst_48 {dimension_numbers = #tpu.dot_dimension_numbers<[1], [0], [0], [1], [0, 0, 1, 1], [], []>} : vector<8x64xbf16>, vector<64x128xbf16>, vector<8x128xf32> -> vector<8x128xf32>
    %284 = vector.broadcast %9 : vector<1x128xf32> to vector<8x128xf32>
    %285 = arith.addf %283, %284 : vector<8x128xf32>
    %286 = vector.extract_strided_slice %285 {offsets = [0, 0], sizes = [8, 64], strides = [1, 1]} : vector<8x128xf32> to vector<8x64xf32>
    %287 = arith.negf %286 : vector<8x64xf32>
    %288 = math.exp %287 : vector<8x64xf32>
    %cst_49 = arith.constant 1.000000e+00 : f32
    %289 = vector.broadcast %cst_49 : f32 to vector<8x64xf32>
    %290 = arith.addf %289, %288 : vector<8x64xf32>
    %291 = arith.divf %289, %290 : vector<8x64xf32>
    %292 = vector.extract_strided_slice %291 {offsets = [0, 0], sizes = [8, 32], strides = [1, 1]} : vector<8x64xf32> to vector<8x32xf32>
    %293 = vector.extract_strided_slice %291 {offsets = [0, 32], sizes = [8, 32], strides = [1, 1]} : vector<8x64xf32> to vector<8x32xf32>
    %294 = vector.extract_strided_slice %285 {offsets = [0, 64], sizes = [8, 32], strides = [1, 1]} : vector<8x128xf32> to vector<8x32xf32>
    %295 = vector.extract_strided_slice %285 {offsets = [0, 96], sizes = [8, 32], strides = [1, 1]} : vector<8x128xf32> to vector<8x32xf32>
    %296 = arith.mulf %292, %295 : vector<8x32xf32>
    %297 = arith.addf %294, %296 : vector<8x32xf32>
    %298 = math.tanh %297 : vector<8x32xf32>
    %cst_50 = arith.constant 1.000000e+00 : f32
    %299 = vector.broadcast %cst_50 : f32 to vector<8x32xf32>
    %300 = arith.subf %299, %293 : vector<8x32xf32>
    %301 = arith.mulf %300, %298 : vector<8x32xf32>
    %302 = arith.mulf %293, %258 : vector<8x32xf32>
    %303 = arith.addf %301, %302 : vector<8x32xf32>
    %304 = vector.extract_strided_slice %6 {offsets = [56, 0], sizes = [8, 128], strides = [1, 1]} : vector<64x128xf32> to vector<8x128xf32>
    %305 = arith.truncf %280 : vector<8x32xf32> to vector<8x32xbf16>
    %cst_51 = arith.constant dense<0.000000e+00> : vector<8x128xf32>
    %306 = tpu.matmul %305, %1, %cst_51 {dimension_numbers = #tpu.dot_dimension_numbers<[1], [0], [0], [1], [0, 0, 1, 1], [], []>} : vector<8x32xbf16>, vector<32x128xbf16>, vector<8x128xf32> -> vector<8x128xf32>
    %307 = arith.addf %304, %306 : vector<8x128xf32>
    %308 = vector.extract_strided_slice %307 {offsets = [0, 0], sizes = [8, 64], strides = [1, 1]} : vector<8x128xf32> to vector<8x64xf32>
    %309 = arith.negf %308 : vector<8x64xf32>
    %310 = math.exp %309 : vector<8x64xf32>
    %cst_52 = arith.constant 1.000000e+00 : f32
    %311 = vector.broadcast %cst_52 : f32 to vector<8x64xf32>
    %312 = arith.addf %311, %310 : vector<8x64xf32>
    %313 = arith.divf %311, %312 : vector<8x64xf32>
    %314 = vector.extract_strided_slice %313 {offsets = [0, 0], sizes = [8, 32], strides = [1, 1]} : vector<8x64xf32> to vector<8x32xf32>
    %315 = vector.extract_strided_slice %313 {offsets = [0, 32], sizes = [8, 32], strides = [1, 1]} : vector<8x64xf32> to vector<8x32xf32>
    %316 = vector.extract_strided_slice %307 {offsets = [0, 64], sizes = [8, 32], strides = [1, 1]} : vector<8x128xf32> to vector<8x32xf32>
    %317 = vector.extract_strided_slice %307 {offsets = [0, 96], sizes = [8, 32], strides = [1, 1]} : vector<8x128xf32> to vector<8x32xf32>
    %318 = arith.mulf %314, %317 : vector<8x32xf32>
    %319 = arith.addf %316, %318 : vector<8x32xf32>
    %320 = math.tanh %319 : vector<8x32xf32>
    %cst_53 = arith.constant 1.000000e+00 : f32
    %321 = vector.broadcast %cst_53 : f32 to vector<8x32xf32>
    %322 = arith.subf %321, %315 : vector<8x32xf32>
    %323 = arith.mulf %322, %320 : vector<8x32xf32>
    %324 = arith.mulf %315, %280 : vector<8x32xf32>
    %325 = arith.addf %323, %324 : vector<8x32xf32>
    %326 = tpu.concatenate %280, %303 in 1 : vector<8x32xf32>, vector<8x32xf32> -> vector<8x64xf32>
    %327 = arith.truncf %326 : vector<8x64xf32> to vector<8x64xbf16>
    %cst_54 = arith.constant dense<0.000000e+00> : vector<8x128xf32>
    %328 = tpu.matmul %327, %8, %cst_54 {dimension_numbers = #tpu.dot_dimension_numbers<[1], [0], [0], [1], [0, 0, 1, 1], [], []>} : vector<8x64xbf16>, vector<64x128xbf16>, vector<8x128xf32> -> vector<8x128xf32>
    %329 = vector.broadcast %9 : vector<1x128xf32> to vector<8x128xf32>
    %330 = arith.addf %328, %329 : vector<8x128xf32>
    %331 = vector.extract_strided_slice %330 {offsets = [0, 0], sizes = [8, 64], strides = [1, 1]} : vector<8x128xf32> to vector<8x64xf32>
    %332 = arith.negf %331 : vector<8x64xf32>
    %333 = math.exp %332 : vector<8x64xf32>
    %cst_55 = arith.constant 1.000000e+00 : f32
    %334 = vector.broadcast %cst_55 : f32 to vector<8x64xf32>
    %335 = arith.addf %334, %333 : vector<8x64xf32>
    %336 = arith.divf %334, %335 : vector<8x64xf32>
    %337 = vector.extract_strided_slice %336 {offsets = [0, 0], sizes = [8, 32], strides = [1, 1]} : vector<8x64xf32> to vector<8x32xf32>
    %338 = vector.extract_strided_slice %336 {offsets = [0, 32], sizes = [8, 32], strides = [1, 1]} : vector<8x64xf32> to vector<8x32xf32>
    %339 = vector.extract_strided_slice %330 {offsets = [0, 64], sizes = [8, 32], strides = [1, 1]} : vector<8x128xf32> to vector<8x32xf32>
    %340 = vector.extract_strided_slice %330 {offsets = [0, 96], sizes = [8, 32], strides = [1, 1]} : vector<8x128xf32> to vector<8x32xf32>
    %341 = arith.mulf %337, %340 : vector<8x32xf32>
    %342 = arith.addf %339, %341 : vector<8x32xf32>
    %343 = math.tanh %342 : vector<8x32xf32>
    %cst_56 = arith.constant 1.000000e+00 : f32
    %344 = vector.broadcast %cst_56 : f32 to vector<8x32xf32>
    %345 = arith.subf %344, %338 : vector<8x32xf32>
    %346 = arith.mulf %345, %343 : vector<8x32xf32>
    %347 = arith.mulf %338, %303 : vector<8x32xf32>
    %348 = arith.addf %346, %347 : vector<8x32xf32>
    %349 = tpu.concatenate %325, %348 in 1 : vector<8x32xf32>, vector<8x32xf32> -> vector<8x64xf32>
    %350 = arith.truncf %349 : vector<8x64xf32> to vector<8x64xbf16>
    %cst_57 = arith.constant dense<0.000000e+00> : vector<8x128xf32>
    %351 = tpu.matmul %350, %8, %cst_57 {dimension_numbers = #tpu.dot_dimension_numbers<[1], [0], [0], [1], [0, 0, 1, 1], [], []>} : vector<8x64xbf16>, vector<64x128xbf16>, vector<8x128xf32> -> vector<8x128xf32>
    %352 = vector.broadcast %9 : vector<1x128xf32> to vector<8x128xf32>
    %353 = arith.addf %351, %352 : vector<8x128xf32>
    %354 = vector.extract_strided_slice %353 {offsets = [0, 0], sizes = [8, 64], strides = [1, 1]} : vector<8x128xf32> to vector<8x64xf32>
    %355 = arith.negf %354 : vector<8x64xf32>
    %356 = math.exp %355 : vector<8x64xf32>
    %cst_58 = arith.constant 1.000000e+00 : f32
    %357 = vector.broadcast %cst_58 : f32 to vector<8x64xf32>
    %358 = arith.addf %357, %356 : vector<8x64xf32>
    %359 = arith.divf %357, %358 : vector<8x64xf32>
    %360 = vector.extract_strided_slice %359 {offsets = [0, 0], sizes = [8, 32], strides = [1, 1]} : vector<8x64xf32> to vector<8x32xf32>
    %361 = vector.extract_strided_slice %359 {offsets = [0, 32], sizes = [8, 32], strides = [1, 1]} : vector<8x64xf32> to vector<8x32xf32>
    %362 = vector.extract_strided_slice %353 {offsets = [0, 64], sizes = [8, 32], strides = [1, 1]} : vector<8x128xf32> to vector<8x32xf32>
    %363 = vector.extract_strided_slice %353 {offsets = [0, 96], sizes = [8, 32], strides = [1, 1]} : vector<8x128xf32> to vector<8x32xf32>
    %364 = arith.mulf %360, %363 : vector<8x32xf32>
    %365 = arith.addf %362, %364 : vector<8x32xf32>
    %366 = math.tanh %365 : vector<8x32xf32>
    %cst_59 = arith.constant 1.000000e+00 : f32
    %367 = vector.broadcast %cst_59 : f32 to vector<8x32xf32>
    %368 = arith.subf %367, %361 : vector<8x32xf32>
    %369 = arith.mulf %368, %366 : vector<8x32xf32>
    %370 = arith.mulf %361, %348 : vector<8x32xf32>
    %371 = arith.addf %369, %370 : vector<8x32xf32>
    %c2 = arith.constant 2 : index
    %c0_60 = arith.constant 0 : index
    %372 = vector.load %arg3[%c2, %c0_60] : memref<3x128xf32, #tpu.memory_space<vmem>>, vector<1x32xf32>
    %c2_61 = arith.constant 2 : index
    %c32 = arith.constant 32 : index
    %373 = vector.load %arg3[%c2_61, %c32] : memref<3x128xf32, #tpu.memory_space<vmem>>, vector<1x1xf32>
    %374 = vector.broadcast %372 : vector<1x32xf32> to vector<8x32xf32>
    %375 = arith.mulf %371, %374 : vector<8x32xf32>
    %cst_62 = arith.constant dense<0.000000e+00> : vector<8xf32>
    %376 = vector.multi_reduction <add>, %375, %cst_62 [1] : vector<8x32xf32> to vector<8xf32>
    %377 = vector.shape_cast %376 : vector<8xf32> to vector<8x1xf32>
    %378 = vector.broadcast %373 : vector<1x1xf32> to vector<8x1xf32>
    %379 = arith.addf %377, %378 : vector<8x1xf32>
    %c0_63 = arith.constant 0 : index
    %c0_64 = arith.constant 0 : index
    %380 = vector.load %arg4[%c0_63, %c0_64] : memref<8x1xf32, #tpu.memory_space<vmem>>, vector<8x1xf32>
    tpu.vector_store %arg4[%c0_63, %c0_64], %379 {strides = array<i32>} : memref<8x1xf32, #tpu.memory_space<vmem>>, vector<8x1xf32>,
    return
  }
}

</mosaic_0001>

<bundles_post_ra>
// kernel: tpu_custom_call.1
= control target key start
LH: loop header
LB: loop body
LE: loop exit
PB: predicated region body
PF: predicated region fallthrough
CT: control target
= control target key end

     0   :  { %9 = vsyncpa [#allocation3], 0  ;;  %s1835_s15 = smov [#allocation2]   ;;  %s2248_s0 = inlined_call_operand.vmem [shape: bf16[64,16], index: 0, kind: input, shape index: {}]   ;;  %s2249_s1 = inlined_call_operand.hbm [shape: bf16[48,128], index: 1, kind: input, shape index: {}]   ;;  %s2250_s2 = inlined_call_operand.vmem [shape: bf16[1,64,128], index: 2, kind: input, shape index: {}]   ;;  %s2251_s3 = inlined_call_operand.vmem [shape: f32[3,128], index: 3, kind: input, shape index: {}]   ;;  %s2252_s4 = inlined_call_operand.vmem [shape: f32[8,1], index: 4, kind: output, shape index: {}]  }
   0x1   :  { %s17_s16 = sshll.u32 %s1835_s15, 4  ;;  %s1811_s19 = scalar_lea.hbm %s2249_s1, 384  ;;  %s18_s16 = int_to_ptr.vmem [resolvable:$true] %s17_s16 }
   0x2   :  { %p1812_p0 = scmp.ne.s32.totalorder %s2249_s1, %s1811_s19  ;;  %p1815_p1 = scmp.lt.u32.totalorder %s1811_s19, %s2249_s1 }
   0x4   :  { %p1817_p2 = pnand %p1815_p1, %p1812_p0 }
   0x6   :  { %1820 = shalt.err (!%p1817_p2)
}
   0x7   :  { %s1821_s24 = scalar_lea.vmem %s18_s16, 384  ;;  %p1826_p4 = scmp.lt.s32.totalorder %s18_s16, %s18_s16 }
   0x8   :  { %p1822_p3 = scmp.ne.s32.totalorder %s18_s16, %s1821_s24  ;;  %p1827_p5 = scmp.lt.s32.totalorder %s1821_s24, %s1821_s24 }
   0xa   :  { %p1828_p6 = por %p1827_p5, %p1826_p4 }
   0xc   :  { %p1829_p7 = pnand %p1828_p6, %p1822_p3 }
   0xe   :  { %1832 = shalt.err (!%p1829_p7)
}
   0xf   :  { %s1836_s25 = smov 64   ;;  %s1837_s26 = smov 4  }
  0x10   :  { %23 = dma.hbm_to_vmem [thread:$0]  %s2249_s1, 384, %s18_s16, [#allocation3], %s1836_s25, %s1836_s25, %s1837_s26  }
  0x11   :  { %1833 = dma.done.wait [#allocation3], 384  }
  0x12   :  { %1834 = vsyncadd [#allocation3], 4294966912  ;;  %v1838_v0 = vmov 0.0   ;;  %vm1839_vm0 = vmmov 0   ;;  %v1703_v1 = vld [vmem:[#allocation2] sm:$0xff]   ;;  %v1885_v2 = vld [vmem:[#allocation2 + $0x8] sm:$0xff]  }
  0x13   :  { %1535 = vmatprep.subr.bf16.mxu1 %v1838_v0  ;;  %1539 = vmatprep.mubr.msk.bf16.mxu1 %vm1839_vm0, %v1838_v0  ;;  %vm77_vm1 = vcmask 130048   ;;  %v1705_v3 = vld [vmem:[%s2248_s0] sm:$0xff]   ;;  %v1706_v4 = vld [vmem:[%s2248_s0 + $0x8] sm:$0xff]   ;;  %v1896_v5 = vld [vmem:[#allocation2 + $0x10] sm:$0xff]   ;;  %v1840_v6 = vmov 0   ;;  %s1841_s8 = smov 32  }
  0x14   :  { %1525 = vmatprep.subr.bf16.mxu0 %v1703_v1  ;;  %1536 = vmatpush3.bf16.msra.mxu1 %v1885_v2  ;;  %v1911_v7 = vld [vmem:[%s2251_s3] ss:$0 sm:$0xff]  ;;  %s1842_s9 = smov 96   ;;  %vm176_vm2 = vcmask 261120   ;;  %v1710_v35 = vld [vmem:[%s2248_s0 + $0x10] sm:$0xff]   ;;  %v1711_v36 = vld [vmem:[%s2248_s0 + $0x18] sm:$0xff]  }
  0x15   :  { %1526 = vmatpush3.bf16.msra.mxu0 %v1703_v1  ;;  %1527 = vmatprep.mubr.msk.bf16.mxu0 %vm77_vm1, %v1705_v3  ;;  %v1936_v34 = vld [vmem:[%s2250_s2] sm:$0xff]   ;;  %v1948_v37 = vld [vmem:[%s2250_s2 + $0x8] sm:$0xff]   ;;  %v1960_v38 = vld [vmem:[%s2250_s2 + $0x10] sm:$0xff]   ;;  %vm353_vm3 = vcmask 523264   ;;  %vm1400_vm4 = vcmask 7168  }
  0x16   :  { %1537 = vmatprep.subr.bf16.mxu1 %v1838_v0  ;;  %1551 = vmatprep.subr.bf16.mxu0 %v1838_v0  ;;  %v1967_v39 = vld [vmem:[%s2250_s2 + $0x18] sm:$0xff]   ;;  %v2000_v62 = vld [vmem:[%s2251_s3 + $0x1] ss:$0 sm:$0xff] }
  0x18   :  { %1528 = vmatmul.mubr.msk.bf16.vlgmr.msra.gmra.mrb[0].mxu0 %vm77_vm1, %v1706_v4  ;;  %1538 = vmatpush3.bf16.msra.mxu1 %v1896_v5 }
  0x19   :  { %1543 = vmatprep.subr.bf16.mxu1 %v1838_v0  ;;  %1552 = vmatpush3.bf16.msra.mxu0 %v1936_v34 }
  0x1a   :  { %1531 = vmatprep.mubr.msk.bf16.mxu0 %vm77_vm1, %v1710_v35  ;;  %1553 = vmatprep.subr.bf16.mxu0 %v1838_v0 }
  0x1b   :  { %1540 = vmatmul.mubr.bf16.vlgmr.msra.gmra.mrb[0].mxu1 %v1840_v6 }
  0x1c   :  { %1544 = vmatpush3.bf16.msra.mxu1 %v1885_v2  ;;  %1547 = vmatprep.mubr.msk.bf16.mxu1 %vm1839_vm0, %v1838_v0 }
  0x1d   :  { %1545 = vmatprep.subr.bf16.mxu1 %v1838_v0  ;;  %1554 = vmatpush3.bf16.msra.mxu0 %v1948_v37 }
  0x1e   :  { %1555 = vmatprep.subr.bf16.mxu0 %v1838_v0 }
  0x20   :  { %1546 = vmatpush3.bf16.msra.mxu1 %v1896_v5  ;;  %1532 = vmatmul.mubr.msk.bf16.gmra.mrb[4].mxu0 %vm77_vm1, %v1711_v36 }
  0x21   :  { %1563 = vmatprep.subr.bf16.mxu1 %v1838_v0  ;;  %1559 = vmatprep.mubr.msk.bf16.mxu0 %vm1839_vm0, %v1838_v0 }
  0x22   :  { %1556 = vmatpush3.bf16.msra.mxu0 %v1960_v38 }
  0x23   :  { %1557 = vmatprep.subr.bf16.mxu0 %v1838_v0 }
  0x26   :  { %1558 = vmatpush3.bf16.msra.mxu0 %v1967_v39 }
  0x27   :  { %1571 = vmatprep.subr.bf16.mxu0 %v1838_v0 }
  0xeb   :  { %v1913_v8 = vpop.f32.mrb[0].mxu0 }
  0xec   :  { %v124_v9 = vpop.f32.mrb[1].mxu0 }
  0xed   :  { %v125_v10 = vadd.f32 %v1911_v7, %v124_v9  ;;  %v1916_v11 = vpop.f32.mrb[2].mxu0 }
  0xee   :  { %v127_v12 = vpop.f32.mrb[3].mxu0  ;;  %v214_v13 = vpop.f32.mrb[0].mxu1 }
  0xef   :  { %v220_v14 = vadd.f32 %v214_v13, %v125_v10  ;;  %v1541_v15 = vpop.f32.mrb[1].mxu1  ;;  %v128_v40 = vadd.f32 %v1911_v7, %v127_v12 }
  0xf0   :  { %v217_v16 = vpop.f32.mrb[2].mxu1 }
  0xf1   :  { %v1542_v17 = vpop.f32.mrb[3].mxu1  ;;  %228 = vrot.lane.b32.xlu0 %v220_v14, %s1841_s8  ;;  %v1419_v18 = vmul.f32 -1.442695, %v220_v14 }
  0xf3   :  { %1714 = vpow2.f32 %v1419_v18  ;;  %v1976_v52 = vpop.f32.mrb[4].mxu0 }
  0xf4   :  { %v1978_v54 = vpop.f32.mrb[5].mxu0 }
  0xf5   :  { %v1981_v56 = vpop.f32.mrb[6].mxu0 }
  0xf6   :  { %v1983_v58 = vpop.f32.mrb[7].mxu0 }
  0xfd   :  { %v1715_v19 = vpop.eup %1714 }
  0xfe   :  { %v224_v20 = vadd.f32 1.0, %v1715_v19 }
 0x100   :  { %1716 = vrcp.f32 %v224_v20 }
 0x10a   :  { %v1717_v21 = vpop.eup %1716 }
 0x10b   :  { %v238_v27 = vsub.f32 1.0, %v1717_v21  ;;  %v244_v29 = vmul.f32 0.0, %v1717_v21 }
 0x163   :  { %v229_v22 = vpop.permute.xlu0 %228 }
 0x164   :  { %v231_v23 = vmul.f32 %v1717_v21, %v229_v22 }
 0x166   :  { %233 = vrot.lane.b32.xlu0 %v231_v23, %s1836_s25 }
 0x1d8   :  { %v234_v24 = vpop.permute.xlu0 %233 }
 0x1d9   :  { %v236_v25 = vadd.f32 %v234_v24, %v220_v14 }
 0x1db   :  { %1718 = vtanh.f32 %v236_v25  ;;  %v133_v25 = vadd.f32 %v1913_v8, %v1911_v7 }
 0x1e5   :  { %v1719_v26 = vpop.eup %1718 }
 0x1e6   :  { %240 = vrot.lane.b32.xlu1 %v1719_v26, %s1842_s9 }
 0x258   :  { %v241_v28 = vpop.permute.xlu1 %240 }
 0x259   :  { %v243_v30 = vmul.f32 %v241_v28, %v238_v27 }
 0x25b   :  { %v1921_v31 = vadd.f32 %v244_v29, %v243_v30 }
 0x25d   :  { %v246_v32 = vpack.c.bf16 %v1921_v31, %v1921_v31 }
 0x25f   :  { %248 = vrot.lane.b32.xlu1 %v246_v32, %s1842_s9 }
 0x2d1   :  { %v249_v33 = vpop.permute.xlu1 %248 }
 0x2d2   :  { %1548 = vmatmul.mubr.msk.bf16.vlgmr.msra.gmra.mrb[4].mxu1 %vm176_vm2, %v249_v33 }
 0x2d3   :  { %1564 = vmatpush3.bf16.msra.mxu1 %v1885_v2  ;;  %1567 = vmatprep.mubr.msk.bf16.mxu1 %vm1839_vm0, %v1838_v0 }
 0x2d4   :  { %1565 = vmatprep.subr.bf16.mxu1 %v1838_v0 }
 0x2d7   :  { %1566 = vmatpush3.bf16.msra.mxu1 %v1896_v5 }
 0x2d8   :  { %1583 = vmatprep.subr.bf16.mxu1 %v1838_v0 }
 0x3a5   :  { %v287_v41 = vpop.f32.mrb[4].mxu1 }
 0x3a6   :  { %v293_v42 = vadd.f32 %v287_v41, %v128_v40  ;;  %v1549_v43 = vpop.f32.mrb[5].mxu1 }
 0x3a7   :  { %v290_v44 = vpop.f32.mrb[6].mxu1 }
 0x3a8   :  { %301 = vrot.lane.b32.xlu0 %v293_v42, %s1841_s8  ;;  %v1550_v45 = vpop.f32.mrb[7].mxu1  ;;  %v1421_v46 = vmul.f32 -1.442695, %v293_v42 }
 0x3aa   :  { %1720 = vpow2.f32 %v1421_v46 }
 0x3ac   :  { %320 = vrot.lane.b32.xlu0 %v1921_v31, %s1842_s9 }
 0x3b4   :  { %v1721_v47 = vpop.eup %1720 }
 0x3b5   :  { %v297_v48 = vadd.f32 1.0, %v1721_v47 }
 0x3b7   :  { %1722 = vrcp.f32 %v297_v48 }
 0x3c1   :  { %v1723_v49 = vpop.eup %1722 }
 0x3c2   :  { %v311_v9 = vsub.f32 1.0, %v1723_v49  ;;  %v317_v12 = vmul.f32 %v1723_v49, %v1921_v31 }
 0x41a   :  { %v302_v50 = vpop.permute.xlu0 %301 }
 0x41b   :  { %v304_v51 = vmul.f32 %v1723_v49, %v302_v50 }
 0x41d   :  { %306 = vrot.lane.b32.xlu1 %v304_v51, %s1836_s25 }
 0x41e   :  { %v321_v53 = vpop.permute.xlu0 %320 }
 0x41f   :  { %v323_v55 = vsel %vm176_vm2, %v321_v53, 0.0 }
 0x420   :  { %v324_v57 = vpack.c.bf16 %v323_v55, %v323_v55 }
 0x422   :  { %1560 = vmatmul.mubr.msk.bf16.vlgmr.msra.gmra.mrb[8].mxu0 %vm353_vm3, %v324_v57 }
 0x423   :  { %1572 = vmatpush3.bf16.msra.mxu0 %v1936_v34  ;;  %1579 = vmatprep.mubr.msk.bf16.mxu0 %vm1839_vm0, %v1838_v0 }
 0x424   :  { %1573 = vmatprep.subr.bf16.mxu0 %v1838_v0 }
 0x427   :  { %1574 = vmatpush3.bf16.msra.mxu0 %v1948_v37 }
 0x428   :  { %1575 = vmatprep.subr.bf16.mxu0 %v1838_v0 }
 0x42b   :  { %1576 = vmatpush3.bf16.msra.mxu0 %v1960_v38 }
 0x42c   :  { %1577 = vmatprep.subr.bf16.mxu0 %v1838_v0 }
 0x42f   :  { %1578 = vmatpush3.bf16.msra.mxu0 %v1967_v39 }
 0x430   :  { %1603 = vmatprep.subr.bf16.mxu0 %v1838_v0 }
 0x48f   :  { %v307_v59 = vpop.permute.xlu1 %306 }
 0x490   :  { %v309_v60 = vadd.f32 %v307_v59, %v293_v42 }
 0x492   :  { %1724 = vtanh.f32 %v309_v60 }
 0x49c   :  { %v1725_v61 = vpop.eup %1724 }
 0x49d   :  { %313 = vrot.lane.b32.xlu1 %v1725_v61, %s1842_s9 }
 0x4f5   :  { %v391_v63 = vpop.f32.mrb[8].mxu0 }
 0x4f6   :  { %v392_v1 = vadd.f32 %v2000_v62, %v391_v63  ;;  %v1561_v3 = vpop.f32.mrb[9].mxu0 }
 0x4f7   :  { %v394_v4 = vpop.f32.mrb[10].mxu0 }
 0x4f8   :  { %v1562_v6 = vpop.f32.mrb[11].mxu0  ;;  %404 = vrot.lane.b32.xlu1 %v392_v1, %s1841_s8  ;;  %v1428_v16 = vmul.f32 -1.442695, %v392_v1 }
 0x4fa   :  { %1726 = vpow2.f32 %v1428_v16 }
 0x504   :  { %v1727_v17 = vpop.eup %1726 }
 0x505   :  { %v400_v18 = vadd.f32 1.0, %v1727_v17 }
 0x507   :  { %1728 = vrcp.f32 %v400_v18 }
 0x50f   :  { %v314_v10 = vpop.permute.xlu1 %313 }
 0x510   :  { %v316_v13 = vmul.f32 %v314_v10, %v311_v9 }
 0x511   :  { %v1729_v19 = vpop.eup %1728 }
 0x512   :  { %v318_v14 = vadd.f32 %v317_v12, %v316_v13  ;;  %v414_v42 = vsub.f32 1.0, %v1729_v19  ;;  %v420_v45 = vmul.f32 0.0, %v1729_v19 }
 0x514   :  { %v422_v15 = vpack.c.bf16 %v318_v14, %v318_v14 }
 0x516   :  { %424 = vrot.lane.b32.xlu0 %v422_v15, %s1842_s9 }
 0x56a   :  { %v405_v20 = vpop.permute.xlu1 %404 }
 0x56b   :  { %v407_v21 = vmul.f32 %v1729_v19, %v405_v20  ;;  %v136_v19 = vadd.f32 %v1916_v11, %v1911_v7 }
 0x56d   :  { %409 = vrot.lane.b32.xlu0 %v407_v21, %s1836_s25 }
 0x588   :  { %v425_v22 = vpop.permute.xlu0 %424 }
 0x589   :  { %1568 = vmatmul.mubr.msk.bf16.vlgmr.msra.gmra.mrb[8].mxu1 %vm176_vm2, %v425_v22 }
 0x58a   :  { %1584 = vmatpush3.bf16.msra.mxu1 %v1885_v2  ;;  %1587 = vmatprep.mubr.msk.bf16.mxu1 %vm1839_vm0, %v1838_v0 }
 0x58b   :  { %1585 = vmatprep.subr.bf16.mxu1 %v1838_v0 }
 0x58e   :  { %1586 = vmatpush3.bf16.msra.mxu1 %v1896_v5 }
 0x58f   :  { %1591 = vmatprep.subr.bf16.mxu1 %v1838_v0 }
 0x5df   :  { %v410_v23 = vpop.permute.xlu0 %409 }
 0x5e0   :  { %v412_v24 = vadd.f32 %v410_v23, %v392_v1 }
 0x5e2   :  { %1730 = vtanh.f32 %v412_v24 }
 0x5ec   :  { %v1731_v31 = vpop.eup %1730 }
 0x65c   :  { %v463_v26 = vpop.f32.mrb[8].mxu1 }
 0x65d   :  { %v469_v27 = vadd.f32 %v463_v26, %v133_v25  ;;  %v1569_v28 = vpop.f32.mrb[9].mxu1 }
 0x65e   :  { %v466_v29 = vpop.f32.mrb[10].mxu1 }
 0x65f   :  { %477 = vrot.lane.b32.xlu1 %v469_v27, %s1841_s8  ;;  %v1570_v30 = vpop.f32.mrb[11].mxu1  ;;  %v1430_v32 = vmul.f32 -1.442695, %v469_v27 }
 0x661   :  { %1732 = vpow2.f32 %v1430_v32 }
 0x663   :  { %416 = vrot.lane.b32.xlu1 %v1731_v31, %s1842_s9 }
 0x66b   :  { %v1733_v33 = vpop.eup %1732 }
 0x66c   :  { %v473_v35 = vadd.f32 1.0, %v1733_v33 }
 0x66e   :  { %1734 = vrcp.f32 %v473_v35 }
 0x678   :  { %v1735_v36 = vpop.eup %1734 }
 0x679   :  { %v487_v53 = vsub.f32 1.0, %v1735_v36  ;;  %v493_v57 = vmul.f32 %v1735_v36, %v318_v14 }
 0x6d1   :  { %v478_v40 = vpop.permute.xlu1 %477 }
 0x6d2   :  { %v480_v41 = vmul.f32 %v1735_v36, %v478_v40 }
 0x6d4   :  { %482 = vrot.lane.b32.xlu0 %v480_v41, %s1836_s25 }
 0x6d5   :  { %v417_v8 = vpop.permute.xlu1 %416 }
 0x6d6   :  { %v419_v43 = vmul.f32 %v417_v8, %v414_v42 }
 0x6d8   :  { %496 = vrot.lane.b32.xlu0 %v318_v14, %s1842_s9  ;;  %v2020_v47 = vadd.f32 %v420_v45, %v419_v43 }
 0x746   :  { %v483_v44 = vpop.permute.xlu0 %482 }
 0x747   :  { %v485_v46 = vadd.f32 %v483_v44, %v469_v27 }
 0x749   :  { %1736 = vtanh.f32 %v485_v46 }
 0x74a   :  { %v497_v48 = vpop.permute.xlu0 %496 }
 0x74b   :  { %v499_v49 = vsel %vm176_vm2, %v497_v48, %v2020_v47 }
 0x74c   :  { %v500_v50 = vpack.c.bf16 %v499_v49, %v499_v49 }
 0x74e   :  { %1580 = vmatmul.mubr.msk.bf16.vlgmr.msra.gmra.mrb[12].mxu0 %vm353_vm3, %v500_v50 }
 0x74f   :  { %1604 = vmatpush3.bf16.msra.mxu0 %v1885_v2  ;;  %1607 = vmatprep.mubr.msk.bf16.mxu0 %vm1839_vm0, %v1838_v0 }
 0x750   :  { %1605 = vmatprep.subr.bf16.mxu0 %v1838_v0 }
 0x753   :  { %v1737_v51 = vpop.eup %1736  ;;  %1606 = vmatpush3.bf16.msra.mxu0 %v1896_v5 }
 0x754   :  { %489 = vrot.lane.b32.xlu1 %v1737_v51, %s1842_s9  ;;  %1611 = vmatprep.subr.bf16.mxu0 %v1838_v0 }
 0x7c6   :  { %v490_v55 = vpop.permute.xlu1 %489 }
 0x7c7   :  { %v492_v59 = vmul.f32 %v490_v55, %v487_v53 }
 0x7c9   :  { %v2032_v60 = vadd.f32 %v493_v57, %v492_v59 }
 0x7cb   :  { %v569_v61 = vpack.c.bf16 %v2032_v60, %v2032_v60 }
 0x7cd   :  { %571 = vrot.lane.b32.xlu0 %v569_v61, %s1842_s9 }
 0x821   :  { %v538_v63 = vpop.f32.mrb[12].mxu0 }
 0x822   :  { %v539_v1 = vadd.f32 %v2000_v62, %v538_v63  ;;  %v1581_v3 = vpop.f32.mrb[13].mxu0 }
 0x823   :  { %v541_v4 = vpop.f32.mrb[14].mxu0 }
 0x824   :  { %551 = vrot.lane.b32.xlu1 %v539_v1, %s1841_s8  ;;  %v1582_v6 = vpop.f32.mrb[15].mxu0  ;;  %v1432_v10 = vmul.f32 -1.442695, %v539_v1 }
 0x826   :  { %1738 = vpow2.f32 %v1432_v10 }
 0x830   :  { %v1739_v12 = vpop.eup %1738 }
 0x831   :  { %v547_v13 = vadd.f32 1.0, %v1739_v12 }
 0x833   :  { %1740 = vrcp.f32 %v547_v13  ;;  %v141_v13 = vadd.f32 %v1911_v7, %v1978_v54 }
 0x83d   :  { %v1741_v14 = vpop.eup %1740 }
 0x83e   :  { %v561_v31 = vsub.f32 1.0, %v1741_v14  ;;  %v567_v33 = vmul.f32 %v1741_v14, %v2020_v47 }
 0x83f   :  { %v572_v9 = vpop.permute.xlu0 %571 }
 0x840   :  { %1588 = vmatmul.mubr.msk.bf16.vlgmr.msra.gmra.mrb[12].mxu1 %vm176_vm2, %v572_v9 }
 0x841   :  { %1592 = vmatpush3.bf16.msra.mxu1 %v1936_v34  ;;  %1599 = vmatprep.mubr.msk.bf16.mxu1 %vm1839_vm0, %v1838_v0 }
 0x842   :  { %1593 = vmatprep.subr.bf16.mxu1 %v1838_v0 }
 0x845   :  { %1594 = vmatpush3.bf16.msra.mxu1 %v1948_v37 }
 0x846   :  { %1595 = vmatprep.subr.bf16.mxu1 %v1838_v0 }
 0x849   :  { %1596 = vmatpush3.bf16.msra.mxu1 %v1960_v38 }
 0x84a   :  { %1597 = vmatprep.subr.bf16.mxu1 %v1838_v0 }
 0x84d   :  { %1598 = vmatpush3.bf16.msra.mxu1 %v1967_v39 }
 0x84e   :  { %1623 = vmatprep.subr.bf16.mxu1 %v1838_v0 }
 0x896   :  { %v552_v15 = vpop.permute.xlu1 %551 }
 0x897   :  { %v554_v16 = vmul.f32 %v1741_v14, %v552_v15 }
 0x899   :  { %556 = vrot.lane.b32.xlu0 %v554_v16, %s1836_s25 }
 0x90b   :  { %v557_v17 = vpop.permute.xlu0 %556 }
 0x90c   :  { %v559_v18 = vadd.f32 %v557_v17, %v539_v1 }
 0x90e   :  { %1742 = vtanh.f32 %v559_v18 }
 0x913   :  { %v610_v20 = vpop.f32.mrb[12].mxu1 }
 0x914   :  { %v616_v21 = vadd.f32 %v610_v20, %v136_v19  ;;  %v1589_v22 = vpop.f32.mrb[13].mxu1 }
 0x915   :  { %v613_v23 = vpop.f32.mrb[14].mxu1 }
 0x916   :  { %624 = vrot.lane.b32.xlu1 %v616_v21, %s1841_s8  ;;  %v1590_v24 = vpop.f32.mrb[15].mxu1  ;;  %v1434_v26 = vmul.f32 -1.442695, %v616_v21 }
 0x918   :  { %v1743_v25 = vpop.eup %1742  ;;  %1744 = vpow2.f32 %v1434_v26 }
 0x919   :  { %563 = vrot.lane.b32.xlu0 %v1743_v25, %s1842_s9 }
 0x91a   :  { %643 = vrot.lane.b32.xlu1 %v2032_v60, %s1842_s9 }
 0x922   :  { %v1745_v27 = vpop.eup %1744 }
 0x923   :  { %v620_v28 = vadd.f32 1.0, %v1745_v27 }
 0x925   :  { %1746 = vrcp.f32 %v620_v28 }
 0x92f   :  { %v1747_v29 = vpop.eup %1746 }
 0x930   :  { %v634_v50 = vsub.f32 1.0, %v1747_v29  ;;  %v640_v53 = vmul.f32 %v1747_v29, %v2032_v60 }
 0x988   :  { %v625_v11 = vpop.permute.xlu1 %624 }
 0x989   :  { %v627_v30 = vmul.f32 %v1747_v29, %v625_v11 }
 0x98b   :  { %v564_v32 = vpop.permute.xlu0 %563  ;;  %629 = vrot.lane.b32.xlu0 %v627_v30, %s1836_s25 }
 0x98c   :  { %v566_v35 = vmul.f32 %v564_v32, %v561_v31  ;;  %v644_v40 = vpop.permute.xlu1 %643 }
 0x98e   :  { %v2059_v36 = vadd.f32 %v567_v33, %v566_v35 }
 0x990   :  { %v646_v41 = vsel %vm176_vm2, %v644_v40, %v2059_v36 }
 0x991   :  { %v647_v8 = vpack.c.bf16 %v646_v41, %v646_v41 }
 0x993   :  { %1600 = vmatmul.mubr.msk.bf16.vlgmr.msra.gmra.mrb[16].mxu1 %vm353_vm3, %v647_v8 }
 0x994   :  { %1624 = vmatpush3.bf16.msra.mxu1 %v1885_v2  ;;  %1627 = vmatprep.mubr.msk.bf16.mxu1 %vm1839_vm0, %v1838_v0 }
 0x995   :  { %1625 = vmatprep.subr.bf16.mxu1 %v1838_v0 }
 0x998   :  { %1626 = vmatpush3.bf16.msra.mxu1 %v1896_v5 }
 0x999   :  { %1631 = vmatprep.subr.bf16.mxu1 %v1838_v0 }
 0x9fd   :  { %v630_v42 = vpop.permute.xlu0 %629 }
 0x9fe   :  { %v632_v43 = vadd.f32 %v630_v42, %v616_v21 }
 0xa00   :  { %1748 = vtanh.f32 %v632_v43 }
 0xa0a   :  { %v1749_v44 = vpop.eup %1748 }
 0xa0b   :  { %636 = vrot.lane.b32.xlu1 %v1749_v44, %s1842_s9 }
 0xa66   :  { %v685_v45 = vpop.f32.mrb[16].mxu1 }
 0xa67   :  { %v686_v46 = vadd.f32 %v2000_v62, %v685_v45  ;;  %v1601_v47 = vpop.f32.mrb[17].mxu1 }
 0xa68   :  { %v688_v48 = vpop.f32.mrb[18].mxu1 }
 0xa69   :  { %698 = vrot.lane.b32.xlu1 %v686_v46, %s1841_s8  ;;  %v1602_v49 = vpop.f32.mrb[19].mxu1  ;;  %v1436_v61 = vmul.f32 -1.442695, %v686_v46 }
 0xa6b   :  { %1750 = vpow2.f32 %v1436_v61 }
 0xa75   :  { %v1751_v63 = vpop.eup %1750 }
 0xa76   :  { %v694_v1 = vadd.f32 1.0, %v1751_v63 }
 0xa78   :  { %1752 = vrcp.f32 %v694_v1 }
 0xa7d   :  { %v637_v51 = vpop.permute.xlu1 %636 }
 0xa7e   :  { %v639_v55 = vmul.f32 %v637_v51, %v634_v50 }
 0xa80   :  { %v2074_v57 = vadd.f32 %v640_v53, %v639_v55 }
 0xa82   :  { %v716_v59 = vpack.c.bf16 %v2074_v57, %v2074_v57  ;;  %v1753_v3 = vpop.eup %1752 }
 0xa83   :  { %v708_v19 = vsub.f32 1.0, %v1753_v3  ;;  %v714_v21 = vmul.f32 %v1753_v3, %v2059_v36 }
 0xa84   :  { %718 = vrot.lane.b32.xlu0 %v716_v59, %s1842_s9 }
 0xadb   :  { %v699_v4 = vpop.permute.xlu1 %698 }
 0xadc   :  { %v701_v6 = vmul.f32 %v1753_v3, %v699_v4 }
 0xade   :  { %703 = vrot.lane.b32.xlu0 %v701_v6, %s1836_s25 }
 0xae2   :  { %790 = vrot.lane.b32.xlu0 %v2074_v57, %s1842_s9 }
 0xaf6   :  { %v719_v60 = vpop.permute.xlu0 %718 }
 0xaf7   :  { %1608 = vmatmul.mubr.msk.bf16.vlgmr.msra.gmra.mrb[16].mxu0 %vm176_vm2, %v719_v60 }
 0xaf8   :  { %1612 = vmatpush3.bf16.msra.mxu0 %v1936_v34  ;;  %1619 = vmatprep.mubr.msk.bf16.mxu0 %vm1839_vm0, %v1838_v0 }
 0xaf9   :  { %1613 = vmatprep.subr.bf16.mxu0 %v1838_v0 }
 0xafc   :  { %1614 = vmatpush3.bf16.msra.mxu0 %v1948_v37 }
 0xafd   :  { %1615 = vmatprep.subr.bf16.mxu0 %v1838_v0 }
 0xb00   :  { %1616 = vmatpush3.bf16.msra.mxu0 %v1960_v38 }
 0xb01   :  { %1617 = vmatprep.subr.bf16.mxu0 %v1838_v0 }
 0xb04   :  { %1618 = vmatpush3.bf16.msra.mxu0 %v1967_v39 }
 0xb05   :  { %1643 = vmatprep.subr.bf16.mxu0 %v1838_v0 }
 0xb50   :  { %v704_v9 = vpop.permute.xlu0 %703 }
 0xb51   :  { %v706_v10 = vadd.f32 %v704_v9, %v686_v46 }
 0xb53   :  { %1754 = vtanh.f32 %v706_v10 }
 0xb54   :  { %v791_v24 = vpop.permute.xlu0 %790 }
 0xb5d   :  { %v1755_v12 = vpop.eup %1754 }
 0xb5e   :  { %710 = vrot.lane.b32.xlu1 %v1755_v12, %s1842_s9 }
 0xbca   :  { %v757_v14 = vpop.f32.mrb[16].mxu0 }
 0xbcb   :  { %v763_v15 = vadd.f32 %v757_v14, %v141_v13  ;;  %v1609_v16 = vpop.f32.mrb[17].mxu0  ;;  %v144_v13 = vadd.f32 %v1911_v7, %v1983_v58 }
 0xbcc   :  { %v760_v17 = vpop.f32.mrb[18].mxu0 }
 0xbcd   :  { %v1610_v18 = vpop.f32.mrb[19].mxu0  ;;  %771 = vrot.lane.b32.xlu1 %v763_v15, %s1841_s8  ;;  %v1438_v54 = vmul.f32 -1.442695, %v763_v15 }
 0xbcf   :  { %1756 = vpow2.f32 %v1438_v54 }
 0xbd0   :  { %v711_v20 = vpop.permute.xlu1 %710 }
 0xbd1   :  { %v713_v22 = vmul.f32 %v711_v20, %v708_v19 }
 0xbd3   :  { %v2098_v23 = vadd.f32 %v714_v21, %v713_v22 }
 0xbd5   :  { %v793_v25 = vsel %vm176_vm2, %v791_v24, %v2098_v23 }
 0xbd6   :  { %v794_v26 = vpack.c.bf16 %v793_v25, %v793_v25 }
 0xbd8   :  { %1620 = vmatmul.mubr.msk.bf16.vlgmr.msra.gmra.mrb[20].mxu0 %vm353_vm3, %v794_v26 }
 0xbd9   :  { %1644 = vmatpush3.bf16.msra.mxu0 %v1885_v2  ;;  %1647 = vmatprep.mubr.msk.bf16.mxu0 %vm1839_vm0, %v1838_v0  ;;  %v1757_v27 = vpop.eup %1756 }
 0xbda   :  { %1645 = vmatprep.subr.bf16.mxu0 %v1838_v0  ;;  %v767_v28 = vadd.f32 1.0, %v1757_v27 }
 0xbdc   :  { %1758 = vrcp.f32 %v767_v28 }
 0xbdd   :  { %1646 = vmatpush3.bf16.msra.mxu0 %v1896_v5 }
 0xbde   :  { %1651 = vmatprep.subr.bf16.mxu0 %v1838_v0 }
 0xbe6   :  { %v1759_v29 = vpop.eup %1758 }
 0xbe7   :  { %v781_v45 = vsub.f32 1.0, %v1759_v29  ;;  %v787_v47 = vmul.f32 %v1759_v29, %v2074_v57 }
 0xc3f   :  { %v772_v11 = vpop.permute.xlu1 %771 }
 0xc40   :  { %v774_v30 = vmul.f32 %v1759_v29, %v772_v11 }
 0xc42   :  { %776 = vrot.lane.b32.xlu0 %v774_v30, %s1836_s25 }
 0xcab   :  { %v832_v31 = vpop.f32.mrb[20].mxu0 }
 0xcac   :  { %v1621_v32 = vpop.f32.mrb[21].mxu0  ;;  %v833_v8 = vadd.f32 %v2000_v62, %v832_v31 }
 0xcad   :  { %v835_v33 = vpop.f32.mrb[22].mxu0 }
 0xcae   :  { %v1622_v35 = vpop.f32.mrb[23].mxu0  ;;  %v1440_v42 = vmul.f32 -1.442695, %v833_v8 }
 0xcb4   :  { %v777_v36 = vpop.permute.xlu0 %776 }
 0xcb5   :  { %v779_v40 = vadd.f32 %v777_v36, %v763_v15 }
 0xcb7   :  { %1760 = vtanh.f32 %v779_v40 }
 0xcb8   :  { %1762 = vpow2.f32 %v1440_v42 }
 0xcc1   :  { %v1761_v41 = vpop.eup %1760 }
 0xcc2   :  { %783 = vrot.lane.b32.xlu1 %v1761_v41, %s1842_s9  ;;  %v1763_v43 = vpop.eup %1762 }
 0xcc3   :  { %v841_v44 = vadd.f32 1.0, %v1763_v43 }
 0xcc5   :  { %1764 = vrcp.f32 %v841_v44 }
 0xcc6   :  { %845 = vrot.lane.b32.xlu1 %v833_v8, %s1841_s8 }
 0xccf   :  { %v1765_v53 = vpop.eup %1764 }
 0xcd0   :  { %v855_v1 = vsub.f32 1.0, %v1765_v53  ;;  %v861_v4 = vmul.f32 %v1765_v53, %v2098_v23 }
 0xd34   :  { %v784_v46 = vpop.permute.xlu1 %783 }
 0xd35   :  { %v786_v48 = vmul.f32 %v784_v46, %v781_v45 }
 0xd37   :  { %v2114_v49 = vadd.f32 %v787_v47, %v786_v48 }
 0xd38   :  { %v846_v51 = vpop.permute.xlu1 %845 }
 0xd39   :  { %v863_v50 = vpack.c.bf16 %v2114_v49, %v2114_v49  ;;  %v848_v55 = vmul.f32 %v1765_v53, %v846_v51 }
 0xd3b   :  { %865 = vrot.lane.b32.xlu0 %v863_v50, %s1842_s9 }
 0xd3f   :  { %850 = vrot.lane.b32.xlu0 %v848_v55, %s1836_s25 }
 0xd43   :  { %937 = vrot.lane.b32.xlu0 %v2114_v49, %s1842_s9 }
 0xdad   :  { %v866_v59 = vpop.permute.xlu0 %865 }
 0xdae   :  { %1628 = vmatmul.mubr.msk.bf16.vlgmr.msra.gmra.mrb[20].mxu1 %vm176_vm2, %v866_v59 }
 0xdaf   :  { %1632 = vmatpush3.bf16.msra.mxu1 %v1936_v34  ;;  %1639 = vmatprep.mubr.msk.bf16.mxu1 %vm1839_vm0, %v1838_v0 }
 0xdb0   :  { %1633 = vmatprep.subr.bf16.mxu1 %v1838_v0 }
 0xdb1   :  { %v851_v57 = vpop.permute.xlu0 %850 }
 0xdb2   :  { %v853_v61 = vadd.f32 %v851_v57, %v833_v8  ;;  %v149_v57 = vadd.f32 %v1976_v52, %v1911_v7 }
 0xdb3   :  { %1634 = vmatpush3.bf16.msra.mxu1 %v1948_v37 }
 0xdb4   :  { %1766 = vtanh.f32 %v853_v61  ;;  %1635 = vmatprep.subr.bf16.mxu1 %v1838_v0 }
 0xdb5   :  { %v938_v9 = vpop.permute.xlu0 %937 }
 0xdb7   :  { %1636 = vmatpush3.bf16.msra.mxu1 %v1960_v38 }
 0xdb8   :  { %1637 = vmatprep.subr.bf16.mxu1 %v1838_v0 }
 0xdbb   :  { %1638 = vmatpush3.bf16.msra.mxu1 %v1967_v39 }
 0xdbc   :  { %1663 = vmatprep.subr.bf16.mxu1 %v1838_v0 }
 0xdbe   :  { %v1767_v63 = vpop.eup %1766 }
 0xdbf   :  { %857 = vrot.lane.b32.xlu1 %v1767_v63, %s1842_s9 }
 0xe31   :  { %v858_v3 = vpop.permute.xlu1 %857 }
 0xe32   :  { %v860_v6 = vmul.f32 %v858_v3, %v855_v1 }
 0xe34   :  { %v2135_v60 = vadd.f32 %v861_v4, %v860_v6 }
 0xe36   :  { %v940_v10 = vsel %vm176_vm2, %v938_v9, %v2135_v60 }
 0xe37   :  { %v941_v12 = vpack.c.bf16 %v940_v10, %v940_v10 }
 0xe39   :  { %1640 = vmatmul.mubr.msk.bf16.vlgmr.msra.gmra.mrb[24].mxu1 %vm353_vm3, %v941_v12 }
 0xe3a   :  { %1664 = vmatpush3.bf16.msra.mxu1 %v1885_v2  ;;  %1667 = vmatprep.mubr.msk.bf16.mxu1 %vm1839_vm0, %v1838_v0 }
 0xe3b   :  { %1665 = vmatprep.subr.bf16.mxu1 %v1838_v0 }
 0xe3e   :  { %1666 = vmatpush3.bf16.msra.mxu1 %v1896_v5 }
 0xe3f   :  { %1671 = vmatprep.subr.bf16.mxu1 %v1838_v0 }
 0xe81   :  { %v904_v14 = vpop.f32.mrb[20].mxu1 }
 0xe82   :  { %v910_v15 = vadd.f32 %v904_v14, %v144_v13  ;;  %v1629_v16 = vpop.f32.mrb[21].mxu1 }
 0xe83   :  { %v907_v17 = vpop.f32.mrb[22].mxu1 }
 0xe84   :  { %918 = vrot.lane.b32.xlu1 %v910_v15, %s1841_s8  ;;  %v1630_v18 = vpop.f32.mrb[23].mxu1  ;;  %v1442_v2 = vmul.f32 -1.442695, %v910_v15 }
 0xe86   :  { %1768 = vpow2.f32 %v1442_v2 }
 0xe90   :  { %v1769_v19 = vpop.eup %1768 }
 0xe91   :  { %v914_v20 = vadd.f32 1.0, %v1769_v19 }
 0xe93   :  { %1770 = vrcp.f32 %v914_v20 }
 0xe9d   :  { %v1771_v21 = vpop.eup %1770 }
 0xe9e   :  { %v928_v35 = vsub.f32 1.0, %v1771_v21  ;;  %v934_v40 = vmul.f32 %v1771_v21, %v2114_v49 }
 0xef6   :  { %v919_v22 = vpop.permute.xlu1 %918 }
 0xef7   :  { %v921_v5 = vmul.f32 %v1771_v21, %v919_v22 }
 0xef9   :  { %923 = vrot.lane.b32.xlu0 %v921_v5, %s1836_s25 }
 0xf0c   :  { %v979_v23 = vpop.f32.mrb[24].mxu1 }
 0xf0d   :  { %v980_v58 = vadd.f32 %v2000_v62, %v979_v23  ;;  %v1641_v24 = vpop.f32.mrb[25].mxu1 }
 0xf0e   :  { %v982_v25 = vpop.f32.mrb[26].mxu1 }
 0xf0f   :  { %992 = vrot.lane.b32.xlu0 %v980_v58, %s1841_s8  ;;  %v1642_v26 = vpop.f32.mrb[27].mxu1  ;;  %v1444_v54 = vmul.f32 -1.442695, %v980_v58 }
 0xf11   :  { %1772 = vpow2.f32 %v1444_v54 }
 0xf1b   :  { %v1773_v29 = vpop.eup %1772 }
 0xf1c   :  { %v988_v11 = vadd.f32 1.0, %v1773_v29 }
 0xf6b   :  { %v924_v27 = vpop.permute.xlu0 %923 }
 0xf6c   :  { %v926_v28 = vadd.f32 %v924_v27, %v910_v15 }
 0xf6e   :  { %1774 = vtanh.f32 %v926_v28 }
 0xf6f   :  { %1776 = vrcp.f32 %v988_v11 }
 0xf78   :  { %v1775_v30 = vpop.eup %1774 }
 0xf79   :  { %930 = vrot.lane.b32.xlu1 %v1775_v30, %s1842_s9  ;;  %v1777_v31 = vpop.eup %1776 }
 0xf7a   :  { %v1002_v47 = vsub.f32 1.0, %v1777_v31  ;;  %v1008_v49 = vmul.f32 %v1777_v31, %v2135_v60 }
 0xf81   :  { %v993_v32 = vpop.permute.xlu0 %992 }
 0xf82   :  { %v995_v33 = vmul.f32 %v1777_v31, %v993_v32 }
 0xf84   :  { %997 = vrot.lane.b32.xlu0 %v995_v33, %s1836_s25 }
 0xfeb   :  { %v931_v36 = vpop.permute.xlu1 %930 }
 0xfec   :  { %v933_v41 = vmul.f32 %v931_v36, %v928_v35 }
 0xfee   :  { %v2155_v8 = vadd.f32 %v934_v40, %v933_v41 }
 0xff0   :  { %1084 = vrot.lane.b32.xlu0 %v2155_v8, %s1842_s9  ;;  %v1010_v42 = vpack.c.bf16 %v2155_v8, %v2155_v8 }
 0xff2   :  { %1012 = vrot.lane.b32.xlu1 %v1010_v42, %s1842_s9 }
 0xff6   :  { %v998_v43 = vpop.permute.xlu0 %997 }
 0xff7   :  { %v1000_v44 = vadd.f32 %v998_v43, %v980_v58 }
 0xff9   :  { %1778 = vtanh.f32 %v1000_v44 }
0x1003   :  { %v1779_v45 = vpop.eup %1778 }
0x1004   :  { %1004 = vrot.lane.b32.xlu1 %v1779_v45, %s1842_s9 }
0x1062   :  { %v1085_v53 = vpop.permute.xlu0 %1084 }
0x1064   :  { %v1013_v46 = vpop.permute.xlu1 %1012 }
0x1065   :  { %1648 = vmatmul.mubr.msk.bf16.vlgmr.msra.gmra.mrb[24].mxu0 %vm176_vm2, %v1013_v46 }
0x1066   :  { %1652 = vmatpush3.bf16.msra.mxu0 %v1936_v34  ;;  %1659 = vmatprep.mubr.msk.bf16.mxu0 %vm1839_vm0, %v1838_v0 }
0x1067   :  { %1653 = vmatprep.subr.bf16.mxu0 %v1838_v0 }
0x106a   :  { %1654 = vmatpush3.bf16.msra.mxu0 %v1948_v37 }
0x106b   :  { %1655 = vmatprep.subr.bf16.mxu0 %v1838_v0 }
0x106e   :  { %1656 = vmatpush3.bf16.msra.mxu0 %v1960_v38 }
0x106f   :  { %1657 = vmatprep.subr.bf16.mxu0 %v1838_v0 }
0x1072   :  { %1658 = vmatpush3.bf16.msra.mxu0 %v1967_v39 }
0x1073   :  { %1683 = vmatprep.subr.bf16.mxu0 %v1838_v0 }
0x1076   :  { %v1005_v48 = vpop.permute.xlu1 %1004 }
0x1077   :  { %v1007_v50 = vmul.f32 %v1005_v48, %v1002_v47 }
0x1079   :  { %v2175_v51 = vadd.f32 %v1008_v49, %v1007_v50 }
0x107b   :  { %v1087_v55 = vsel %vm176_vm2, %v1085_v53, %v2175_v51 }
0x107c   :  { %v1088_v59 = vpack.c.bf16 %v1087_v55, %v1087_v55 }
0x107e   :  { %1660 = vmatmul.mubr.msk.bf16.vlgmr.msra.gmra.mrb[28].mxu0 %vm353_vm3, %v1088_v59 }
0x107f   :  { %1684 = vmatpush3.bf16.msra.mxu0 %v1936_v34  ;;  %1691 = vmatprep.mubr.msk.bf16.mxu0 %vm1839_vm0, %v1838_v0 }
0x1080   :  { %1685 = vmatprep.subr.bf16.mxu0 %v1838_v0 }
0x1083   :  { %1686 = vmatpush3.bf16.msra.mxu0 %v1948_v37 }
0x1084   :  { %1687 = vmatprep.subr.bf16.mxu0 %v1838_v0 }
0x1087   :  { %1688 = vmatpush3.bf16.msra.mxu0 %v1960_v38 }
0x1088   :  { %1689 = vmatprep.subr.bf16.mxu0 %v1838_v0 }
0x108b   :  { %1690 = vmatpush3.bf16.msra.mxu0 %v1967_v39 }
0x1138   :  { %v1051_v61 = vpop.f32.mrb[24].mxu0 }
0x1139   :  { %v1057_v63 = vadd.f32 %v1051_v61, %v149_v57  ;;  %v1649_v1 = vpop.f32.mrb[25].mxu0 }
0x113a   :  { %v1054_v3 = vpop.f32.mrb[26].mxu0 }
0x113b   :  { %v1650_v4 = vpop.f32.mrb[27].mxu0  ;;  %1065 = vrot.lane.b32.xlu1 %v1057_v63, %s1841_s8  ;;  %v1446_v13 = vmul.f32 -1.442695, %v1057_v63 }
0x113d   :  { %1780 = vpow2.f32 %v1446_v13 }
0x1147   :  { %v1781_v14 = vpop.eup %1780 }
0x1148   :  { %v1061_v15 = vadd.f32 1.0, %v1781_v14 }
0x114a   :  { %1782 = vrcp.f32 %v1061_v15 }
0x1151   :  { %v1126_v6 = vpop.f32.mrb[28].mxu0 }
0x1152   :  { %v1127_v60 = vadd.f32 %v2000_v62, %v1126_v6  ;;  %v1661_v9 = vpop.f32.mrb[29].mxu0 }
0x1153   :  { %v1129_v10 = vpop.f32.mrb[30].mxu0 }
0x1154   :  { %1139 = vrot.lane.b32.xlu1 %v1127_v60, %s1841_s8  ;;  %v1662_v12 = vpop.f32.mrb[31].mxu0  ;;  %v1448_v7 = vmul.f32 -1.442695, %v1127_v60  ;;  %v1783_v52 = vpop.eup %1782 }
0x1155   :  { %v1075_v26 = vsub.f32 1.0, %v1783_v52  ;;  %v1081_v27 = vmul.f32 %v1783_v52, %v2155_v8 }
0x1156   :  { %1784 = vpow2.f32 %v1448_v7 }
0x1160   :  { %v1785_v18 = vpop.eup %1784 }
0x1161   :  { %v1135_v2 = vadd.f32 1.0, %v1785_v18 }
0x1163   :  { %1786 = vrcp.f32 %v1135_v2 }
0x116d   :  { %v1787_v19 = vpop.eup %1786 }
0x116e   :  { %v1149_v32 = vsub.f32 1.0, %v1787_v19  ;;  %v1155_v35 = vmul.f32 %v1787_v19, %v2175_v51 }
0x11ad   :  { %v1066_v16 = vpop.permute.xlu1 %1065 }
0x11ae   :  { %v1068_v17 = vmul.f32 %v1783_v52, %v1066_v16 }
0x11b0   :  { %1070 = vrot.lane.b32.xlu0 %v1068_v17, %s1836_s25 }
0x11c6   :  { %v1140_v20 = vpop.permute.xlu1 %1139 }
0x11c7   :  { %v1142_v21 = vmul.f32 %v1787_v19, %v1140_v20 }
0x11c9   :  { %1144 = vrot.lane.b32.xlu1 %v1142_v21, %s1836_s25 }
0x1222   :  { %v1071_v22 = vpop.permute.xlu0 %1070 }
0x1223   :  { %v1073_v5 = vadd.f32 %v1071_v22, %v1057_v63 }
0x1225   :  { %1788 = vtanh.f32 %v1073_v5 }
0x122f   :  { %v1789_v23 = vpop.eup %1788 }
0x1230   :  { %1077 = vrot.lane.b32.xlu0 %v1789_v23, %s1842_s9 }
0x123b   :  { %v1145_v58 = vpop.permute.xlu1 %1144 }
0x123c   :  { %v1147_v24 = vadd.f32 %v1145_v58, %v1127_v60 }
0x123e   :  { %1790 = vtanh.f32 %v1147_v24 }
0x1248   :  { %v1791_v25 = vpop.eup %1790 }
0x1249   :  { %1151 = vrot.lane.b32.xlu1 %v1791_v25, %s1842_s9 }
0x12a2   :  { %v1078_v54 = vpop.permute.xlu0 %1077 }
0x12a3   :  { %v1080_v28 = vmul.f32 %v1078_v54, %v1075_v26 }
0x12a5   :  { %v2199_v29 = vadd.f32 %v1081_v27, %v1080_v28 }
0x12a7   :  { %v1157_v11 = vpack.c.bf16 %v2199_v29, %v2199_v29 }
0x12a9   :  { %1159 = vrot.lane.b32.xlu0 %v1157_v11, %s1842_s9 }
0x12ad   :  { %1231 = vrot.lane.b32.xlu0 %v2199_v29, %s1842_s9 }
0x12bb   :  { %v1152_v31 = vpop.permute.xlu1 %1151 }
0x12bc   :  { %v1154_v33 = vmul.f32 %v1152_v31, %v1149_v32 }
0x12be   :  { %v1156_v40 = vadd.f32 %v1155_v35, %v1154_v33 }
0x131b   :  { %v1160_v30 = vpop.permute.xlu0 %1159 }
0x131c   :  { %1668 = vmatmul.mubr.msk.bf16.vlgmr.msra.gmra.mrb[28].mxu1 %vm176_vm2, %v1160_v30  ;;  %v1455_v30 = vld [vmem:[%s2251_s3 + $0x2] ss:$0 sm:$0xff] }
0x131d   :  { %1672 = vmatpush3.bf16.msra.mxu1 %v1936_v34  ;;  %1679 = vmatprep.mubr.msk.bf16.mxu1 %vm1839_vm0, %v1838_v0 }
0x131e   :  { %1673 = vmatprep.subr.bf16.mxu1 %v1838_v0 }
0x131f   :  { %v1232_v36 = vpop.permute.xlu0 %1231 }
0x1320   :  { %v1234_v34 = vsel %vm176_vm2, %v1232_v36, %v1156_v40 }
0x1321   :  { %1674 = vmatpush3.bf16.msra.mxu1 %v1948_v37  ;;  %v1235_v41 = vpack.c.bf16 %v1234_v34, %v1234_v34  ;;  %v1810_v37 = vld [vmem:[%s2251_s3] ss:$0 sm:$0xff] }
0x1322   :  { %1675 = vmatprep.subr.bf16.mxu1 %v1838_v0  ;;  %v152_v8 = vadd.f32 %v1810_v37, %v1981_v56 }
0x1325   :  { %1676 = vmatpush3.bf16.msra.mxu1 %v1960_v38 }
0x1326   :  { %1677 = vmatprep.subr.bf16.mxu1 %v1838_v0 }
0x1329   :  { %1678 = vmatpush3.bf16.msra.mxu1 %v1967_v39 }
0x132c   :  { %1680 = vmatmul.mubr.msk.bf16.vlgmr.msra.gmra.mrb[32].mxu1 %vm353_vm3, %v1235_v41 }
0x13ef   :  { %v1198_v42 = vpop.f32.mrb[28].mxu1 }
0x13f0   :  { %v1204_v43 = vadd.f32 %v1198_v42, %v152_v8  ;;  %v1669_v44 = vpop.f32.mrb[29].mxu1 }
0x13f1   :  { %v1201_v45 = vpop.f32.mrb[30].mxu1 }
0x13f2   :  { %1212 = vrot.lane.b32.xlu1 %v1204_v43, %s1841_s8  ;;  %v1670_v0 = vpop.f32.mrb[31].mxu1  ;;  %v1450_v49 = vmul.f32 -1.442695, %v1204_v43 }
0x13f4   :  { %1792 = vpow2.f32 %v1450_v49 }
0x13fe   :  { %v1793_v50 = vpop.eup %1792 }
0x13ff   :  { %v1273_v38 = vpop.f32.mrb[32].mxu1  ;;  %v1208_v56 = vadd.f32 1.0, %v1793_v50 }
0x1400   :  { %v1274_v46 = vadd.f32 %v2000_v62, %v1273_v38  ;;  %v1681_v39 = vpop.f32.mrb[33].mxu1 }
0x1401   :  { %v1276_v47 = vpop.f32.mrb[34].mxu1 }
0x1402   :  { %1286 = vrot.lane.b32.xlu0 %v1274_v46, %s1841_s8  ;;  %v1682_v48 = vpop.f32.mrb[35].mxu1  ;;  %v1452_v51 = vmul.f32 -1.442695, %v1274_v46 }
0x1404   :  { %1794 = vpow2.f32 %v1452_v51 }
0x1405   :  { %1796 = vrcp.f32 %v1208_v56 }
0x140e   :  { %v1795_v53 = vpop.eup %1794 }
0x140f   :  { %v1797_v55 = vpop.eup %1796  ;;  %v1282_v61 = vadd.f32 1.0, %v1795_v53 }
0x1410   :  { %v1222_v13 = vsub.f32 1.0, %v1797_v55  ;;  %v1228_v15 = vmul.f32 %v1797_v55, %v2199_v29 }
0x1411   :  { %1798 = vrcp.f32 %v1282_v61 }
0x141b   :  { %v1799_v63 = vpop.eup %1798 }
0x141c   :  { %v1296_v17 = vsub.f32 1.0, %v1799_v63  ;;  %v1302_v2 = vmul.f32 %v1799_v63, %v1156_v40 }
0x1464   :  { %v1213_v59 = vpop.permute.xlu1 %1212 }
0x1465   :  { %v1215_v57 = vmul.f32 %v1797_v55, %v1213_v59 }
0x1467   :  { %1217 = vrot.lane.b32.xlu1 %v1215_v57, %s1836_s25 }
0x1474   :  { %v1287_v1 = vpop.permute.xlu0 %1286 }
0x1475   :  { %v1289_v3 = vmul.f32 %v1799_v63, %v1287_v1 }
0x1477   :  { %1291 = vrot.lane.b32.xlu0 %v1289_v3, %s1836_s25 }
0x14d9   :  { %v1218_v4 = vpop.permute.xlu1 %1217 }
0x14da   :  { %v1220_v6 = vadd.f32 %v1218_v4, %v1204_v43 }
0x14dc   :  { %1800 = vtanh.f32 %v1220_v6 }
0x14e6   :  { %v1801_v60 = vpop.eup %1800 }
0x14e7   :  { %1224 = vrot.lane.b32.xlu1 %v1801_v60, %s1842_s9 }
0x14e9   :  { %v1292_v9 = vpop.permute.xlu0 %1291 }
0x14ea   :  { %v1294_v10 = vadd.f32 %v1292_v9, %v1274_v46 }
0x14ec   :  { %1802 = vtanh.f32 %v1294_v10 }
0x14f6   :  { %v1803_v12 = vpop.eup %1802 }
0x14f7   :  { %1298 = vrot.lane.b32.xlu0 %v1803_v12, %s1842_s9 }
0x1559   :  { %v1225_v14 = vpop.permute.xlu1 %1224 }
0x155a   :  { %v1227_v7 = vmul.f32 %v1225_v14, %v1222_v13 }
0x155c   :  { %v1229_v52 = vadd.f32 %v1228_v15, %v1227_v7 }
0x155e   :  { %1305 = vrot.lane.b32.xlu1 %v1229_v52, %s1842_s9 }
0x1569   :  { %v1299_v16 = vpop.permute.xlu0 %1298 }
0x156a   :  { %v1301_v18 = vmul.f32 %v1299_v16, %v1296_v17 }
0x156c   :  { %v1303_v19 = vadd.f32 %v1302_v2, %v1301_v18 }
0x15d0   :  { %v1306_v20 = vpop.permute.xlu1 %1305 }
0x15d1   :  { %v1308_v21 = vsel %vm176_vm2, %v1306_v20, %v1303_v19 }
0x15d2   :  { %v1309_v22 = vpack.c.bf16 %v1308_v21, %v1308_v21 }
0x15d4   :  { %1692 = vmatmul.mubr.msk.bf16.vlgmr.msra.gmra.mrb[32].mxu0 %vm353_vm3, %v1309_v22 }
0x16a7   :  { %v1347_v5 = vpop.f32.mrb[32].mxu0 }
0x16a8   :  { %v1348_v23 = vadd.f32 %v2000_v62, %v1347_v5  ;;  %v1693_v58 = vpop.f32.mrb[33].mxu0 }
0x16a9   :  { %v1350_v24 = vpop.f32.mrb[34].mxu0 }
0x16aa   :  { %1360 = vrot.lane.b32.xlu0 %v1348_v23, %s1841_s8  ;;  %v1694_v25 = vpop.f32.mrb[35].mxu0  ;;  %v1454_v26 = vmul.f32 -1.442695, %v1348_v23 }
0x16ac   :  { %1804 = vpow2.f32 %v1454_v26 }
0x16b6   :  { %v1805_v54 = vpop.eup %1804 }
0x16b7   :  { %v1356_v27 = vadd.f32 1.0, %v1805_v54 }
0x16b9   :  { %1806 = vrcp.f32 %v1356_v27 }
0x16c3   :  { %v1807_v28 = vpop.eup %1806 }
0x16c4   :  { %v1370_v33 = vsub.f32 1.0, %v1807_v28  ;;  %v1376_v40 = vmul.f32 %v1807_v28, %v1303_v19 }
0x171c   :  { %v1361_v29 = vpop.permute.xlu0 %1360 }
0x171d   :  { %v1363_v11 = vmul.f32 %v1807_v28, %v1361_v29 }
0x171f   :  { %1365 = vrot.lane.b32.xlu1 %v1363_v11, %s1836_s25 }
0x1723   :  { %1384 = vrot.lane.b32.xlu1 %v1455_v30, %s1841_s8 }
0x1791   :  { %v1366_v62 = vpop.permute.xlu1 %1365 }
0x1792   :  { %v1368_v31 = vadd.f32 %v1366_v62, %v1348_v23 }
0x1794   :  { %1808 = vtanh.f32 %v1368_v31 }
0x1795   :  { %v1385_v34 = vpop.permute.xlu1 %1384 }
0x179e   :  { %v1809_v32 = vpop.eup %1808 }
0x179f   :  { %1372 = vrot.lane.b32.xlu0 %v1809_v32, %s1842_s9 }
0x1811   :  { %v1373_v35 = vpop.permute.xlu0 %1372 }
0x1812   :  { %v1375_v36 = vmul.f32 %v1373_v35, %v1370_v33 }
0x1814   :  { %v1377_v41 = vadd.f32 %v1376_v40, %v1375_v36 }
0x1816   :  { %v1387_v37 = vmul.f32 %v1385_v34, %v1377_v41 }
0x1818   :  { %1389 = vrot.lane.b32.xlu0 %v1387_v37, %s1842_s9 }
0x188a   :  { %v1390_v8 = vpop.permute.xlu0 %1389 }
0x188b   :  { %v1392_v42 = vsel %vm176_vm2, %v1390_v8, 0.0 }
0x188c   :  { %1393 = vadd.xlane.f32.xlu1 %v1392_v42 }
0x1919   :  { %v1394_v43 = vpop.xlane.xlu1 %1393 }
0x191a   :  { %v1395_v44 = vadd.f32 %v1455_v30, %v1394_v43 }
0x191c   :  { %1397 = vrot.lane.b32.xlu0 %v1395_v44, %s1842_s9 }
0x198e   :  { %v1398_v45 = vpop.permute.xlu0 %1397 }
0x198f   :  { %1401 = vst.msk [vmem:[%s2252_s4] sm:$0xff] %vm1400_vm4, %v1398_v45 }
0x1990   :  { %1406 = vsyncpa [#allocation3], 1 }

</bundles_post_ra>
